<compile_context>
chip_gen: v6e
topology: v6e:2x2x1
jax: 0.10.0
libtpu: 0.0.40
codegen_flags: <defaults>
</compile_context>

<pallas_src>
import jax
import jax.numpy as jnp
from jax.experimental import pallas as pl
from jax.experimental.pallas import tpu as pltpu


def _node_update_kernel(blk_lo_ref, blk_hi_ref,          # scalar prefetch (SMEM)
                        col_ref, hid_ref, catT_ref,
                        w1s_ref, w1c_ref, w1d_ref, b1_ref,
                        w2_ref, b2_ref, w3_ref, b3_ref, w4_ref, b4_ref,
                        w5_ref, b5_ref,
                        out_ref,
                        sums_acc, mn_acc, mx_acc):
    e = pl.program_id(1)
    num_e = pl.num_programs(1)
    TE = col_ref.shape[0]
    TN = out_ref.shape[1]
    H = hid_ref.shape[1]                               # 5 hidden edge features

    @pl.when(e == 0)
    def _init():
        sums_acc[...] = jnp.zeros(sums_acc.shape, jnp.float32)
        mn_acc[...] = jnp.full(mn_acc.shape, jnp.inf, jnp.float32)
        mx_acc[...] = jnp.full(mx_acc.shape, -jnp.inf, jnp.float32)

    node_base = pl.program_id(0) * TN
    # Skip edge blocks whose target-node id range cannot touch this node
    # block (edges are sorted by target node in the wrapper, so most tiles
    # are skipped and only the cheap scalar check + tiny DMA remains).
    overlaps = jnp.logical_and(blk_hi_ref[e] >= node_base,
                               blk_lo_ref[e] < node_base + TN)

    @pl.when(overlaps)
    def _accumulate():
        # One-hot mask: edges on sublanes, nodes on lanes (lane-dense, TN>=128).
        node_ids = jax.lax.broadcasted_iota(jnp.int32, (TE, TN), 1) + node_base
        col = col_ref[...]                              # (TE, 1); padding = -1
        mask = col == node_ids                          # (TE, TN) bool
        maskf = mask.astype(jnp.float32)

        # Fused scatter-sum of [dds | hidden | 1] in a single MXU matmul.
        sums_acc[...] += jnp.dot(catT_ref[...], maskf,
                                 preferred_element_type=jnp.float32)   # (8, TN)

        # Masked min/max over the edge (sublane) axis.  Penalty built once:
        # masked-in -> 0, masked-out -> +inf; per feature only add + reduce.
        pen = jnp.where(mask, 0.0, jnp.inf)             # (TE, TN)
        hid = hid_ref[...]                              # (TE, H)
        for h in range(H):
            v = hid[:, h:h + 1]                         # (TE, 1)
            mh = jnp.min(v + pen, axis=0, keepdims=True)   # masked-out -> +inf
            xh = jnp.max(v - pen, axis=0, keepdims=True)   # masked-out -> -inf
            mn_acc[h:h + 1, :] = jnp.minimum(mn_acc[h:h + 1, :], mh)
            mx_acc[h:h + 1, :] = jnp.maximum(mx_acc[h:h + 1, :], xh)

    @pl.when(e == num_e - 1)
    def _finalize():
        sums = sums_acc[...]                            # (8, TN): [dd|sum|cnt]
        cnt = sums[7:8, :]                              # (1, TN)
        has_edge = cnt > 0.0
        # torch_scatter fill value for empty segments is 0
        mn = jnp.where(has_edge, mn_acc[...], 0.0)      # (5, TN)
        mx = jnp.where(has_edge, mx_acc[...], 0.0)      # (5, TN)

        def mm(a_ref, x):
            return jnp.dot(a_ref[...], x, preferred_element_type=jnp.float32)

        # First layer: W1 split into row blocks, so no feature concatenation.
        x = mm(w1s_ref, sums) + mm(w1c_ref, mn) + mm(w1d_ref, mx) + b1_ref[...]
        x = jnp.maximum(x, 0.0)
        x = jnp.maximum(mm(w2_ref, x) + b2_ref[...], 0.0)
        x = jnp.maximum(mm(w3_ref, x) + b3_ref[...], 0.0)
        x = jnp.maximum(mm(w4_ref, x) + b4_ref[...], 0.0)
        out_ref[...] = mm(w5_ref, x) + b5_ref[...]      # (2, TN) lane-dense


def _round_up(x, m):
    return ((x + m - 1) // m) * m


def node_update(edge_index, edge_attr, params, num_nodes, *,
                tn=256, te=512, sort_edges=True):
    """edge_index: (2, E) int, edge_attr: (E, 7) float -> (num_nodes, 2) f32."""
    E = edge_attr.shape[0]
    # nodes map to lanes (multiple of 128); edges map to sublanes.
    tn = max(128, min(tn, _round_up(num_nodes, 128)))
    te = max(128, min(te, _round_up(E, 128)))
    n_pad = _round_up(num_nodes, tn)
    e_pad = _round_up(E, te)
    num_eb = e_pad // te

    col = edge_index[1].astype(jnp.int32)
    ea = edge_attr.astype(jnp.float32)
    if sort_edges:
        # Scatter reductions are permutation invariant; sorting edges by their
        # target node makes every edge block span a narrow node-id range, so
        # the in-kernel overlap guard skips most (node, edge) tiles.
        order = jnp.argsort(col)
        col = col[order]
        ea = ea[order]

    col_p = jnp.full((e_pad, 1), -1, jnp.int32).at[:E, 0].set(col)
    hid_p = jnp.zeros((e_pad, 5), jnp.float32).at[:E].set(ea[:, 2:])
    cat = jnp.concatenate([ea[:, :2], ea[:, 2:],
                           jnp.ones((E, 1), jnp.float32)], axis=1)      # (E, 8)
    catT_p = jnp.zeros((8, e_pad), jnp.float32).at[:, :E].set(cat.T)

    # Per-edge-block target-node id range for the skip guard (prefetched).
    colb = col_p[:, 0].reshape(num_eb, te)
    valid = colb >= 0
    blk_lo = jnp.min(jnp.where(valid, colb, jnp.int32(2 ** 30)), axis=1)
    blk_hi = jnp.max(jnp.where(valid, colb, jnp.int32(-1)), axis=1)
    blk_lo = blk_lo.astype(jnp.int32)
    blk_hi = blk_hi.astype(jnp.int32)

    (w1, b1), (w2, b2), (w3, b3), (w4, b4), (w5, b5) = params
    w1T = jnp.asarray(w1, jnp.float32).T                                # (32, 17)
    w1s = jnp.concatenate([w1T[:, 0:7], jnp.zeros((32, 1), jnp.float32)],
                          axis=1)                                       # (32, 8)
    flat = [
        w1s, w1T[:, 7:12], w1T[:, 12:17],
        jnp.asarray(b1, jnp.float32).reshape(-1, 1),
        jnp.asarray(w2, jnp.float32).T, jnp.asarray(b2, jnp.float32).reshape(-1, 1),
        jnp.asarray(w3, jnp.float32).T, jnp.asarray(b3, jnp.float32).reshape(-1, 1),
        jnp.asarray(w4, jnp.float32).T, jnp.asarray(b4, jnp.float32).reshape(-1, 1),
        jnp.asarray(w5, jnp.float32).T, jnp.asarray(b5, jnp.float32).reshape(-1, 1),
    ]

    def pinned(shape):
        # weights stay VMEM-resident: block index never changes -> single DMA
        return pl.BlockSpec(shape, lambda i, e, lo, hi: (0, 0))

    in_specs = [
        pl.BlockSpec((te, 1), lambda i, e, lo, hi: (e, 0)),   # col (edge targets)
        pl.BlockSpec((te, 5), lambda i, e, lo, hi: (e, 0)),   # hidden features
        pl.BlockSpec((8, te), lambda i, e, lo, hi: (0, e)),   # [dds|hid|1]^T
    ] + [pinned(p.shape) for p in flat]

    grid_spec = pltpu.PrefetchScalarGridSpec(
        num_scalar_prefetch=2,
        grid=(n_pad // tn, num_eb),
        in_specs=in_specs,
        out_specs=pl.BlockSpec((2, tn), lambda i, e, lo, hi: (0, i)),
        scratch_shapes=[pltpu.VMEM((8, tn), jnp.float32),    # dd | sum | count
                        pltpu.VMEM((5, tn), jnp.float32),    # running min
                        pltpu.VMEM((5, tn), jnp.float32)],   # running max
    )

    out = pl.pallas_call(
        _node_update_kernel,
        out_shape=jax.ShapeDtypeStruct((2, n_pad), jnp.float32),
        grid_spec=grid_spec,
        compiler_params=pltpu.CompilerParams(
            dimension_semantics=("parallel", "arbitrary")),
    )(blk_lo, blk_hi, col_p, hid_p, catT_p, *flat)

    return out[:, :num_nodes].T                          # (num_nodes, 2)


def init_params(key):
    """Deterministic init of the 17->32->32->32->32->2 MLP."""
    dims = [(17, 32), (32, 32), (32, 32), (32, 32), (32, 2)]
    params = []
    for (din, dout) in dims:
        key, kw, kb = jax.random.split(key, 3)
        bound = 1.0 / jnp.sqrt(jnp.float32(din))
        w = jax.random.uniform(kw, (din, dout), jnp.float32, -bound, bound)
        b = jax.random.uniform(kb, (dout,), jnp.float32, -bound, bound)
        params.append((w, b))
    return params


def reference(edge_index, edge_attr, params, num_nodes):
    col = edge_index[1]
    dds = edge_attr[:, :2]
    hidden = edge_attr[:, 2:]
    dd = jax.ops.segment_sum(dds, col, num_segments=num_nodes)
    s = jax.ops.segment_sum(hidden, col, num_segments=num_nodes)
    mn = jax.ops.segment_min(hidden, col, num_segments=num_nodes)
    mx = jax.ops.segment_max(hidden, col, num_segments=num_nodes)
    x = jnp.concatenate([dd, s, mn, mx], axis=1)
    for i, (w, b) in enumerate(params):
        x = x @ w + b
        if i < len(params) - 1:
            x = jnp.maximum(x, 0.0)
    return x


def _make_graph(key, num_nodes, num_edges):
    k1, k2, k3 = jax.random.split(key, 3)
    # ensure every node receives at least one edge (keeps ref comparison simple)
    col = jnp.concatenate(
        [jnp.arange(num_nodes, dtype=jnp.int32),
         jax.random.randint(k1, (num_edges - num_nodes,), 0, num_nodes, jnp.int32)])
    row = jax.random.randint(k2, (num_edges,), 0, num_nodes, jnp.int32)
    edge_index = jnp.stack([row, col], axis=0)                      # (2, E)
    edge_attr = jax.random.normal(k3, (num_edges, 7), jnp.float32)  # (E, 7)
    return edge_index, edge_attr


if __name__ == "__main__":
    params = init_params(jax.random.PRNGKey(42))

    # Test 1: small graph, single tile.
    edge_index, edge_attr = _make_graph(jax.random.PRNGKey(0), 8, 16)
    out = jax.block_until_ready(node_update(edge_index, edge_attr, params, 8))
    ref = reference(edge_index, edge_attr, params, 8)
    assert out.shape == (8, 2)
    assert jnp.allclose(out, ref, atol=1e-4, rtol=1e-4)

    # Test 2: multiple node blocks and multiple edge blocks (exercises the
    # init / accumulate / finalize pipeline plus the block-skip guard with
    # sorted edges).
    edge_index2, edge_attr2 = _make_graph(jax.random.PRNGKey(1), 200, 600)
    out2 = jax.block_until_ready(
        node_update(edge_index2, edge_attr2, params, 200, tn=128, te=128))
    ref2 = reference(edge_index2, edge_attr2, params, 200)
    assert out2.shape == (200, 2)
    assert jnp.allclose(out2, ref2, atol=1e-4, rtol=1e-4)

    # Test 3: same graph without the sort preprocessing (guard must still be
    # correct on an unsorted edge list).
    out3 = jax.block_until_ready(
        node_update(edge_index2, edge_attr2, params, 200, tn=128, te=128,
                    sort_edges=False))
    assert jnp.allclose(out3, ref2, atol=1e-4, rtol=1e-4)

    print("KERNEL_OK")
</pallas_src>

<mosaic_0001>
module attributes {stable_mosaic.version = 11 : i64} {
  func.func @_node_update_kernel(%arg0: i32, %arg1: i32, %arg2: memref<1xi32, #tpu.memory_space<smem>>, %arg3: memref<1xi32, #tpu.memory_space<smem>>, %arg4: memref<128x1xi32, #tpu.memory_space<vmem>>, %arg5: memref<128x5xf32, #tpu.memory_space<vmem>>, %arg6: memref<8x128xf32, #tpu.memory_space<vmem>>, %arg7: memref<32x8xf32, #tpu.memory_space<vmem>>, %arg8: memref<32x5xf32, #tpu.memory_space<vmem>>, %arg9: memref<32x5xf32, #tpu.memory_space<vmem>>, %arg10: memref<32x1xf32, #tpu.memory_space<vmem>>, %arg11: memref<32x32xf32, #tpu.memory_space<vmem>>, %arg12: memref<32x1xf32, #tpu.memory_space<vmem>>, %arg13: memref<32x32xf32, #tpu.memory_space<vmem>>, %arg14: memref<32x1xf32, #tpu.memory_space<vmem>>, %arg15: memref<32x32xf32, #tpu.memory_space<vmem>>, %arg16: memref<32x1xf32, #tpu.memory_space<vmem>>, %arg17: memref<2x32xf32, #tpu.memory_space<vmem>>, %arg18: memref<2x1xf32, #tpu.memory_space<vmem>>, %arg19: memref<2x128xf32, #tpu.memory_space<vmem>>, %arg20: memref<8x128xf32, #tpu.memory_space<vmem>>, %arg21: memref<5x128xf32, #tpu.memory_space<vmem>>, %arg22: memref<5x128xf32, #tpu.memory_space<vmem>>) attributes {dimension_semantics = [#tpu.dimension_semantics<parallel>, #tpu.dimension_semantics<arbitrary>], iteration_bounds = array<i64: 1, 1>, scalar_prefetch = 2 : i64, scratch_operands = 3 : i64, tpu.core_type = #tpu.core_type<tc>, window_params = [{transform_indices = @transform_0, window_bounds = array<i64: 128, 1>}, {transform_indices = @transform_1, window_bounds = array<i64: 128, 5>}, {transform_indices = @transform_2, window_bounds = array<i64: 8, 128>}, {pipeline_mode = #tpu.pipeline_mode<synchronous>, transform_indices = @transform_3, window_bounds = array<i64: 32, 8>}, {pipeline_mode = #tpu.pipeline_mode<synchronous>, transform_indices = @transform_4, window_bounds = array<i64: 32, 5>}, {pipeline_mode = #tpu.pipeline_mode<synchronous>, transform_indices = @transform_5, window_bounds = array<i64: 32, 5>}, {pipeline_mode = #tpu.pipeline_mode<synchronous>, transform_indices = @transform_6, window_bounds = array<i64: 32, 1>}, {pipeline_mode = #tpu.pipeline_mode<synchronous>, transform_indices = @transform_7, window_bounds = array<i64: 32, 32>}, {pipeline_mode = #tpu.pipeline_mode<synchronous>, transform_indices = @transform_8, window_bounds = array<i64: 32, 1>}, {pipeline_mode = #tpu.pipeline_mode<synchronous>, transform_indices = @transform_9, window_bounds = array<i64: 32, 32>}, {pipeline_mode = #tpu.pipeline_mode<synchronous>, transform_indices = @transform_10, window_bounds = array<i64: 32, 1>}, {pipeline_mode = #tpu.pipeline_mode<synchronous>, transform_indices = @transform_11, window_bounds = array<i64: 32, 32>}, {pipeline_mode = #tpu.pipeline_mode<synchronous>, transform_indices = @transform_12, window_bounds = array<i64: 32, 1>}, {pipeline_mode = #tpu.pipeline_mode<synchronous>, transform_indices = @transform_13, window_bounds = array<i64: 2, 32>}, {pipeline_mode = #tpu.pipeline_mode<synchronous>, transform_indices = @transform_14, window_bounds = array<i64: 2, 1>}, {transform_indices = @transform_15, window_bounds = array<i64: 2, 128>}]} {
    %c0_i32 = arith.constant 0 : i32
    %0 = arith.cmpi eq, %arg1, %c0_i32 : i32
    %1 = arith.extui %0 : i1 to i32
    %c0_i32_0 = arith.constant 0 : i32
    %2 = arith.cmpi ne, %1, %c0_i32_0 : i32
    scf.if %2 {
      %cst = arith.constant 0.000000e+00 : f32
      %17 = vector.broadcast %cst : f32 to vector<8x128xf32>
      %c0 = arith.constant 0 : index
      %c0_5 = arith.constant 0 : index
      %18 = vector.load %arg20[%c0, %c0_5] : memref<8x128xf32, #tpu.memory_space<vmem>>, vector<8x128xf32>
      tpu.vector_store %arg20[%c0, %c0_5], %17 {strides = array<i32>} : memref<8x128xf32, #tpu.memory_space<vmem>>, vector<8x128xf32>,
      %cst_6 = arith.constant 0x7F800000 : f32
      %19 = vector.broadcast %cst_6 : f32 to vector<5x128xf32>
      %c0_7 = arith.constant 0 : index
      %c0_8 = arith.constant 0 : index
      %20 = vector.load %arg21[%c0_7, %c0_8] : memref<5x128xf32, #tpu.memory_space<vmem>>, vector<5x128xf32>
      tpu.vector_store %arg21[%c0_7, %c0_8], %19 {strides = array<i32>} : memref<5x128xf32, #tpu.memory_space<vmem>>, vector<5x128xf32>,
      %cst_9 = arith.constant 0xFF800000 : f32
      %21 = vector.broadcast %cst_9 : f32 to vector<5x128xf32>
      %c0_10 = arith.constant 0 : index
      %c0_11 = arith.constant 0 : index
      %22 = vector.load %arg22[%c0_10, %c0_11] : memref<5x128xf32, #tpu.memory_space<vmem>>, vector<5x128xf32>
      tpu.vector_store %arg22[%c0_10, %c0_11], %21 {strides = array<i32>} : memref<5x128xf32, #tpu.memory_space<vmem>>, vector<5x128xf32>,
    } else {
    }
    %c128_i32 = arith.constant 128 : i32
    %3 = arith.muli %arg0, %c128_i32 : i32
    %4 = arith.index_cast %arg1 : i32 to index
    %5 = memref.load %arg3[%4] : memref<1xi32, #tpu.memory_space<smem>>
    %6 = arith.cmpi sge, %5, %3 : i32
    %7 = arith.index_cast %arg1 : i32 to index
    %8 = memref.load %arg2[%7] : memref<1xi32, #tpu.memory_space<smem>>
    %c128_i32_1 = arith.constant 128 : i32
    %9 = arith.addi %3, %c128_i32_1 : i32
    %10 = arith.cmpi slt, %8, %9 : i32
    %11 = arith.andi %6, %10 : i1
    %12 = arith.extui %11 : i1 to i32
    %c0_i32_2 = arith.constant 0 : i32
    %13 = arith.cmpi ne, %12, %c0_i32_2 : i32
    scf.if %13 {
      %17 = tpu.iota {dimensions = array<i32: 1>} : vector<128x128xi32>
      %18 = vector.broadcast %3 : i32 to vector<128x128xi32>
      %19 = arith.addi %17, %18 : vector<128x128xi32>
      %c0 = arith.constant 0 : index
      %c0_5 = arith.constant 0 : index
      %20 = vector.load %arg4[%c0, %c0_5] : memref<128x1xi32, #tpu.memory_space<vmem>>, vector<128x1xi32>
      %21 = vector.broadcast %20 : vector<128x1xi32> to vector<128x128xi32>
      %22 = arith.cmpi eq, %21, %19 : vector<128x128xi32>
      %23 = arith.extui %22 : vector<128x128xi1> to vector<128x128xi32>
      %24 = arith.sitofp %23 : vector<128x128xi32> to vector<128x128xf32>
      %c0_6 = arith.constant 0 : index
      %c0_7 = arith.constant 0 : index
      %25 = vector.load %arg20[%c0_6, %c0_7] : memref<8x128xf32, #tpu.memory_space<vmem>>, vector<8x128xf32>
      %c0_8 = arith.constant 0 : index
      %c0_9 = arith.constant 0 : index
      %26 = vector.load %arg6[%c0_8, %c0_9] : memref<8x128xf32, #tpu.memory_space<vmem>>, vector<8x128xf32>
      %cst = arith.constant dense<0.000000e+00> : vector<8x128xf32>
      %27 = tpu.matmul %26, %24, %cst {dimension_numbers = #tpu.dot_dimension_numbers<[1], [0], [0], [1], [0, 0, 1, 1], [], []>} : vector<8x128xf32>, vector<128x128xf32>, vector<8x128xf32> -> vector<8x128xf32>
      %28 = arith.addf %25, %27 : vector<8x128xf32>
      %c0_10 = arith.constant 0 : index
      %c0_11 = arith.constant 0 : index
      %29 = vector.load %arg20[%c0_10, %c0_11] : memref<8x128xf32, #tpu.memory_space<vmem>>, vector<8x128xf32>
      tpu.vector_store %arg20[%c0_10, %c0_11], %28 {strides = array<i32>} : memref<8x128xf32, #tpu.memory_space<vmem>>, vector<8x128xf32>,
      %cst_12 = arith.constant 0.000000e+00 : f32
      %cst_13 = arith.constant 0x7F800000 : f32
      %30 = vector.broadcast %cst_12 : f32 to vector<128x128xf32>
      %31 = vector.broadcast %cst_13 : f32 to vector<128x128xf32>
      %32 = arith.select %22, %30, %31 : vector<128x128xi1>, vector<128x128xf32>
      %c0_14 = arith.constant 0 : index
      %c0_15 = arith.constant 0 : index
      %33 = vector.load %arg5[%c0_14, %c0_15] : memref<128x5xf32, #tpu.memory_space<vmem>>, vector<128x5xf32>
      %34 = vector.extract_strided_slice %33 {offsets = [0, 0], sizes = [128, 1], strides = [1, 1]} : vector<128x5xf32> to vector<128x1xf32>
      %35 = vector.broadcast %34 : vector<128x1xf32> to vector<128x128xf32>
      %36 = arith.addf %35, %32 : vector<128x128xf32>
      %cst_16 = arith.constant dense<0x7F800000> : vector<128xf32>
      %37 = vector.multi_reduction <minimumf>, %36, %cst_16 [0] : vector<128x128xf32> to vector<128xf32>
      %38 = vector.shape_cast %37 : vector<128xf32> to vector<1x128xf32>
      %39 = vector.broadcast %34 : vector<128x1xf32> to vector<128x128xf32>
      %40 = arith.subf %39, %32 : vector<128x128xf32>
      %cst_17 = arith.constant dense<0xFF800000> : vector<128xf32>
      %41 = vector.multi_reduction <maximumf>, %40, %cst_17 [0] : vector<128x128xf32> to vector<128xf32>
      %42 = vector.shape_cast %41 : vector<128xf32> to vector<1x128xf32>
      %c0_18 = arith.constant 0 : index
      %c0_19 = arith.constant 0 : index
      %43 = vector.load %arg21[%c0_18, %c0_19] : memref<5x128xf32, #tpu.memory_space<vmem>>, vector<1x128xf32>
      %44 = arith.minimumf %43, %38 : vector<1x128xf32>
      %c0_20 = arith.constant 0 : index
      %c0_21 = arith.constant 0 : index
      %45 = vector.load %arg21[%c0_20, %c0_21] : memref<5x128xf32, #tpu.memory_space<vmem>>, vector<1x128xf32>
      tpu.vector_store %arg21[%c0_20, %c0_21], %44 {strides = array<i32>} : memref<5x128xf32, #tpu.memory_space<vmem>>, vector<1x128xf32>,
      %c0_22 = arith.constant 0 : index
      %c0_23 = arith.constant 0 : index
      %46 = vector.load %arg22[%c0_22, %c0_23] : memref<5x128xf32, #tpu.memory_space<vmem>>, vector<1x128xf32>
      %47 = arith.maximumf %46, %42 : vector<1x128xf32>
      %c0_24 = arith.constant 0 : index
      %c0_25 = arith.constant 0 : index
      %48 = vector.load %arg22[%c0_24, %c0_25] : memref<5x128xf32, #tpu.memory_space<vmem>>, vector<1x128xf32>
      tpu.vector_store %arg22[%c0_24, %c0_25], %47 {strides = array<i32>} : memref<5x128xf32, #tpu.memory_space<vmem>>, vector<1x128xf32>,
      %49 = vector.extract_strided_slice %33 {offsets = [0, 1], sizes = [128, 1], strides = [1, 1]} : vector<128x5xf32> to vector<128x1xf32>
      %50 = vector.broadcast %49 : vector<128x1xf32> to vector<128x128xf32>
      %51 = arith.addf %50, %32 : vector<128x128xf32>
      %cst_26 = arith.constant dense<0x7F800000> : vector<128xf32>
      %52 = vector.multi_reduction <minimumf>, %51, %cst_26 [0] : vector<128x128xf32> to vector<128xf32>
      %53 = vector.shape_cast %52 : vector<128xf32> to vector<1x128xf32>
      %54 = vector.broadcast %49 : vector<128x1xf32> to vector<128x128xf32>
      %55 = arith.subf %54, %32 : vector<128x128xf32>
      %cst_27 = arith.constant dense<0xFF800000> : vector<128xf32>
      %56 = vector.multi_reduction <maximumf>, %55, %cst_27 [0] : vector<128x128xf32> to vector<128xf32>
      %57 = vector.shape_cast %56 : vector<128xf32> to vector<1x128xf32>
      %c1 = arith.constant 1 : index
      %c0_28 = arith.constant 0 : index
      %58 = vector.load %arg21[%c1, %c0_28] : memref<5x128xf32, #tpu.memory_space<vmem>>, vector<1x128xf32>
      %59 = arith.minimumf %58, %53 : vector<1x128xf32>
      %c1_29 = arith.constant 1 : index
      %c0_30 = arith.constant 0 : index
      %60 = vector.load %arg21[%c1_29, %c0_30] : memref<5x128xf32, #tpu.memory_space<vmem>>, vector<1x128xf32>
      tpu.vector_store %arg21[%c1_29, %c0_30], %59 {strides = array<i32>} : memref<5x128xf32, #tpu.memory_space<vmem>>, vector<1x128xf32>,
      %c1_31 = arith.constant 1 : index
      %c0_32 = arith.constant 0 : index
      %61 = vector.load %arg22[%c1_31, %c0_32] : memref<5x128xf32, #tpu.memory_space<vmem>>, vector<1x128xf32>
      %62 = arith.maximumf %61, %57 : vector<1x128xf32>
      %c1_33 = arith.constant 1 : index
      %c0_34 = arith.constant 0 : index
      %63 = vector.load %arg22[%c1_33, %c0_34] : memref<5x128xf32, #tpu.memory_space<vmem>>, vector<1x128xf32>
      tpu.vector_store %arg22[%c1_33, %c0_34], %62 {strides = array<i32>} : memref<5x128xf32, #tpu.memory_space<vmem>>, vector<1x128xf32>,
      %64 = vector.extract_strided_slice %33 {offsets = [0, 2], sizes = [128, 1], strides = [1, 1]} : vector<128x5xf32> to vector<128x1xf32>
      %65 = vector.broadcast %64 : vector<128x1xf32> to vector<128x128xf32>
      %66 = arith.addf %65, %32 : vector<128x128xf32>
      %cst_35 = arith.constant dense<0x7F800000> : vector<128xf32>
      %67 = vector.multi_reduction <minimumf>, %66, %cst_35 [0] : vector<128x128xf32> to vector<128xf32>
      %68 = vector.shape_cast %67 : vector<128xf32> to vector<1x128xf32>
      %69 = vector.broadcast %64 : vector<128x1xf32> to vector<128x128xf32>
      %70 = arith.subf %69, %32 : vector<128x128xf32>
      %cst_36 = arith.constant dense<0xFF800000> : vector<128xf32>
      %71 = vector.multi_reduction <maximumf>, %70, %cst_36 [0] : vector<128x128xf32> to vector<128xf32>
      %72 = vector.shape_cast %71 : vector<128xf32> to vector<1x128xf32>
      %c2 = arith.constant 2 : index
      %c0_37 = arith.constant 0 : index
      %73 = vector.load %arg21[%c2, %c0_37] : memref<5x128xf32, #tpu.memory_space<vmem>>, vector<1x128xf32>
      %74 = arith.minimumf %73, %68 : vector<1x128xf32>
      %c2_38 = arith.constant 2 : index
      %c0_39 = arith.constant 0 : index
      %75 = vector.load %arg21[%c2_38, %c0_39] : memref<5x128xf32, #tpu.memory_space<vmem>>, vector<1x128xf32>
      tpu.vector_store %arg21[%c2_38, %c0_39], %74 {strides = array<i32>} : memref<5x128xf32, #tpu.memory_space<vmem>>, vector<1x128xf32>,
      %c2_40 = arith.constant 2 : index
      %c0_41 = arith.constant 0 : index
      %76 = vector.load %arg22[%c2_40, %c0_41] : memref<5x128xf32, #tpu.memory_space<vmem>>, vector<1x128xf32>
      %77 = arith.maximumf %76, %72 : vector<1x128xf32>
      %c2_42 = arith.constant 2 : index
      %c0_43 = arith.constant 0 : index
      %78 = vector.load %arg22[%c2_42, %c0_43] : memref<5x128xf32, #tpu.memory_space<vmem>>, vector<1x128xf32>
      tpu.vector_store %arg22[%c2_42, %c0_43], %77 {strides = array<i32>} : memref<5x128xf32, #tpu.memory_space<vmem>>, vector<1x128xf32>,
      %79 = vector.extract_strided_slice %33 {offsets = [0, 3], sizes = [128, 1], strides = [1, 1]} : vector<128x5xf32> to vector<128x1xf32>
      %80 = vector.broadcast %79 : vector<128x1xf32> to vector<128x128xf32>
      %81 = arith.addf %80, %32 : vector<128x128xf32>
      %cst_44 = arith.constant dense<0x7F800000> : vector<128xf32>
      %82 = vector.multi_reduction <minimumf>, %81, %cst_44 [0] : vector<128x128xf32> to vector<128xf32>
      %83 = vector.shape_cast %82 : vector<128xf32> to vector<1x128xf32>
      %84 = vector.broadcast %79 : vector<128x1xf32> to vector<128x128xf32>
      %85 = arith.subf %84, %32 : vector<128x128xf32>
      %cst_45 = arith.constant dense<0xFF800000> : vector<128xf32>
      %86 = vector.multi_reduction <maximumf>, %85, %cst_45 [0] : vector<128x128xf32> to vector<128xf32>
      %87 = vector.shape_cast %86 : vector<128xf32> to vector<1x128xf32>
      %c3 = arith.constant 3 : index
      %c0_46 = arith.constant 0 : index
      %88 = vector.load %arg21[%c3, %c0_46] : memref<5x128xf32, #tpu.memory_space<vmem>>, vector<1x128xf32>
      %89 = arith.minimumf %88, %83 : vector<1x128xf32>
      %c3_47 = arith.constant 3 : index
      %c0_48 = arith.constant 0 : index
      %90 = vector.load %arg21[%c3_47, %c0_48] : memref<5x128xf32, #tpu.memory_space<vmem>>, vector<1x128xf32>
      tpu.vector_store %arg21[%c3_47, %c0_48], %89 {strides = array<i32>} : memref<5x128xf32, #tpu.memory_space<vmem>>, vector<1x128xf32>,
      %c3_49 = arith.constant 3 : index
      %c0_50 = arith.constant 0 : index
      %91 = vector.load %arg22[%c3_49, %c0_50] : memref<5x128xf32, #tpu.memory_space<vmem>>, vector<1x128xf32>
      %92 = arith.maximumf %91, %87 : vector<1x128xf32>
      %c3_51 = arith.constant 3 : index
      %c0_52 = arith.constant 0 : index
      %93 = vector.load %arg22[%c3_51, %c0_52] : memref<5x128xf32, #tpu.memory_space<vmem>>, vector<1x128xf32>
      tpu.vector_store %arg22[%c3_51, %c0_52], %92 {strides = array<i32>} : memref<5x128xf32, #tpu.memory_space<vmem>>, vector<1x128xf32>,
      %94 = vector.extract_strided_slice %33 {offsets = [0, 4], sizes = [128, 1], strides = [1, 1]} : vector<128x5xf32> to vector<128x1xf32>
      %95 = vector.broadcast %94 : vector<128x1xf32> to vector<128x128xf32>
      %96 = arith.addf %95, %32 : vector<128x128xf32>
      %cst_53 = arith.constant dense<0x7F800000> : vector<128xf32>
      %97 = vector.multi_reduction <minimumf>, %96, %cst_53 [0] : vector<128x128xf32> to vector<128xf32>
      %98 = vector.shape_cast %97 : vector<128xf32> to vector<1x128xf32>
      %99 = vector.broadcast %94 : vector<128x1xf32> to vector<128x128xf32>
      %100 = arith.subf %99, %32 : vector<128x128xf32>
      %cst_54 = arith.constant dense<0xFF800000> : vector<128xf32>
      %101 = vector.multi_reduction <maximumf>, %100, %cst_54 [0] : vector<128x128xf32> to vector<128xf32>
      %102 = vector.shape_cast %101 : vector<128xf32> to vector<1x128xf32>
      %c4 = arith.constant 4 : index
      %c0_55 = arith.constant 0 : index
      %103 = vector.load %arg21[%c4, %c0_55] : memref<5x128xf32, #tpu.memory_space<vmem>>, vector<1x128xf32>
      %104 = arith.minimumf %103, %98 : vector<1x128xf32>
      %c4_56 = arith.constant 4 : index
      %c0_57 = arith.constant 0 : index
      %105 = vector.load %arg21[%c4_56, %c0_57] : memref<5x128xf32, #tpu.memory_space<vmem>>, vector<1x128xf32>
      tpu.vector_store %arg21[%c4_56, %c0_57], %104 {strides = array<i32>} : memref<5x128xf32, #tpu.memory_space<vmem>>, vector<1x128xf32>,
      %c4_58 = arith.constant 4 : index
      %c0_59 = arith.constant 0 : index
      %106 = vector.load %arg22[%c4_58, %c0_59] : memref<5x128xf32, #tpu.memory_space<vmem>>, vector<1x128xf32>
      %107 = arith.maximumf %106, %102 : vector<1x128xf32>
      %c4_60 = arith.constant 4 : index
      %c0_61 = arith.constant 0 : index
      %108 = vector.load %arg22[%c4_60, %c0_61] : memref<5x128xf32, #tpu.memory_space<vmem>>, vector<1x128xf32>
      tpu.vector_store %arg22[%c4_60, %c0_61], %107 {strides = array<i32>} : memref<5x128xf32, #tpu.memory_space<vmem>>, vector<1x128xf32>,
    } else {
    }
    %c0_i32_3 = arith.constant 0 : i32
    %14 = arith.cmpi eq, %arg1, %c0_i32_3 : i32
    %15 = arith.extui %14 : i1 to i32
    %c0_i32_4 = arith.constant 0 : i32
    %16 = arith.cmpi ne, %15, %c0_i32_4 : i32
    scf.if %16 {
      %c0 = arith.constant 0 : index
      %c0_5 = arith.constant 0 : index
      %17 = vector.load %arg20[%c0, %c0_5] : memref<8x128xf32, #tpu.memory_space<vmem>>, vector<8x128xf32>
      %18 = vector.extract_strided_slice %17 {offsets = [7, 0], sizes = [1, 128], strides = [1, 1]} : vector<8x128xf32> to vector<1x128xf32>
      %cst = arith.constant 0.000000e+00 : f32
      %19 = vector.broadcast %cst : f32 to vector<1x128xf32>
      %20 = arith.cmpf ogt, %18, %19 : vector<1x128xf32>
      %c0_6 = arith.constant 0 : index
      %c0_7 = arith.constant 0 : index
      %21 = vector.load %arg21[%c0_6, %c0_7] : memref<5x128xf32, #tpu.memory_space<vmem>>, vector<5x128xf32>
      %cst_8 = arith.constant 0.000000e+00 : f32
      %22 = vector.shape_cast %20 : vector<1x128xi1> to vector<1x128xi1>
      %23 = vector.broadcast %22 : vector<1x128xi1> to vector<5x128xi1>
      %24 = vector.broadcast %cst_8 : f32 to vector<5x128xf32>
      %25 = arith.select %23, %21, %24 : vector<5x128xi1>, vector<5x128xf32>
      %c0_9 = arith.constant 0 : index
      %c0_10 = arith.constant 0 : index
      %26 = vector.load %arg22[%c0_9, %c0_10] : memref<5x128xf32, #tpu.memory_space<vmem>>, vector<5x128xf32>
      %cst_11 = arith.constant 0.000000e+00 : f32
      %27 = vector.shape_cast %20 : vector<1x128xi1> to vector<1x128xi1>
      %28 = vector.broadcast %27 : vector<1x128xi1> to vector<5x128xi1>
      %29 = vector.broadcast %cst_11 : f32 to vector<5x128xf32>
      %30 = arith.select %28, %26, %29 : vector<5x128xi1>, vector<5x128xf32>
      %c0_12 = arith.constant 0 : index
      %c0_13 = arith.constant 0 : index
      %31 = vector.load %arg7[%c0_12, %c0_13] : memref<32x8xf32, #tpu.memory_space<vmem>>, vector<32x8xf32>
      %cst_14 = arith.constant dense<0.000000e+00> : vector<32x128xf32>
      %32 = tpu.matmul %31, %17, %cst_14 {dimension_numbers = #tpu.dot_dimension_numbers<[1], [0], [0], [1], [0, 0, 1, 1], [], []>} : vector<32x8xf32>, vector<8x128xf32>, vector<32x128xf32> -> vector<32x128xf32>
      %c0_15 = arith.constant 0 : index
      %c0_16 = arith.constant 0 : index
      %33 = vector.load %arg8[%c0_15, %c0_16] : memref<32x5xf32, #tpu.memory_space<vmem>>, vector<32x5xf32>
      %cst_17 = arith.constant dense<0.000000e+00> : vector<32x128xf32>
      %34 = tpu.matmul %33, %25, %cst_17 {dimension_numbers = #tpu.dot_dimension_numbers<[1], [0], [0], [1], [0, 0, 1, 1], [], []>} : vector<32x5xf32>, vector<5x128xf32>, vector<32x128xf32> -> vector<32x128xf32>
      %35 = arith.addf %32, %34 : vector<32x128xf32>
      %c0_18 = arith.constant 0 : index
      %c0_19 = arith.constant 0 : index
      %36 = vector.load %arg9[%c0_18, %c0_19] : memref<32x5xf32, #tpu.memory_space<vmem>>, vector<32x5xf32>
      %cst_20 = arith.constant dense<0.000000e+00> : vector<32x128xf32>
      %37 = tpu.matmul %36, %30, %cst_20 {dimension_numbers = #tpu.dot_dimension_numbers<[1], [0], [0], [1], [0, 0, 1, 1], [], []>} : vector<32x5xf32>, vector<5x128xf32>, vector<32x128xf32> -> vector<32x128xf32>
      %38 = arith.addf %35, %37 : vector<32x128xf32>
      %c0_21 = arith.constant 0 : index
      %c0_22 = arith.constant 0 : index
      %39 = vector.load %arg10[%c0_21, %c0_22] : memref<32x1xf32, #tpu.memory_space<vmem>>, vector<32x1xf32>
      %40 = vector.broadcast %39 : vector<32x1xf32> to vector<32x128xf32>
      %41 = arith.addf %38, %40 : vector<32x128xf32>
      %cst_23 = arith.constant 0.000000e+00 : f32
      %42 = vector.broadcast %cst_23 : f32 to vector<32x128xf32>
      %43 = arith.maximumf %41, %42 : vector<32x128xf32>
      %c0_24 = arith.constant 0 : index
      %c0_25 = arith.constant 0 : index
      %44 = vector.load %arg11[%c0_24, %c0_25] : memref<32x32xf32, #tpu.memory_space<vmem>>, vector<32x32xf32>
      %cst_26 = arith.constant dense<0.000000e+00> : vector<32x128xf32>
      %45 = tpu.matmul %44, %43, %cst_26 {dimension_numbers = #tpu.dot_dimension_numbers<[1], [0], [0], [1], [0, 0, 1, 1], [], []>} : vector<32x32xf32>, vector<32x128xf32>, vector<32x128xf32> -> vector<32x128xf32>
      %c0_27 = arith.constant 0 : index
      %c0_28 = arith.constant 0 : index
      %46 = vector.load %arg12[%c0_27, %c0_28] : memref<32x1xf32, #tpu.memory_space<vmem>>, vector<32x1xf32>
      %47 = vector.broadcast %46 : vector<32x1xf32> to vector<32x128xf32>
      %48 = arith.addf %45, %47 : vector<32x128xf32>
      %cst_29 = arith.constant 0.000000e+00 : f32
      %49 = vector.broadcast %cst_29 : f32 to vector<32x128xf32>
      %50 = arith.maximumf %48, %49 : vector<32x128xf32>
      %c0_30 = arith.constant 0 : index
      %c0_31 = arith.constant 0 : index
      %51 = vector.load %arg13[%c0_30, %c0_31] : memref<32x32xf32, #tpu.memory_space<vmem>>, vector<32x32xf32>
      %cst_32 = arith.constant dense<0.000000e+00> : vector<32x128xf32>
      %52 = tpu.matmul %51, %50, %cst_32 {dimension_numbers = #tpu.dot_dimension_numbers<[1], [0], [0], [1], [0, 0, 1, 1], [], []>} : vector<32x32xf32>, vector<32x128xf32>, vector<32x128xf32> -> vector<32x128xf32>
      %c0_33 = arith.constant 0 : index
      %c0_34 = arith.constant 0 : index
      %53 = vector.load %arg14[%c0_33, %c0_34] : memref<32x1xf32, #tpu.memory_space<vmem>>, vector<32x1xf32>
      %54 = vector.broadcast %53 : vector<32x1xf32> to vector<32x128xf32>
      %55 = arith.addf %52, %54 : vector<32x128xf32>
      %cst_35 = arith.constant 0.000000e+00 : f32
      %56 = vector.broadcast %cst_35 : f32 to vector<32x128xf32>
      %57 = arith.maximumf %55, %56 : vector<32x128xf32>
      %c0_36 = arith.constant 0 : index
      %c0_37 = arith.constant 0 : index
      %58 = vector.load %arg15[%c0_36, %c0_37] : memref<32x32xf32, #tpu.memory_space<vmem>>, vector<32x32xf32>
      %cst_38 = arith.constant dense<0.000000e+00> : vector<32x128xf32>
      %59 = tpu.matmul %58, %57, %cst_38 {dimension_numbers = #tpu.dot_dimension_numbers<[1], [0], [0], [1], [0, 0, 1, 1], [], []>} : vector<32x32xf32>, vector<32x128xf32>, vector<32x128xf32> -> vector<32x128xf32>
      %c0_39 = arith.constant 0 : index
      %c0_40 = arith.constant 0 : index
      %60 = vector.load %arg16[%c0_39, %c0_40] : memref<32x1xf32, #tpu.memory_space<vmem>>, vector<32x1xf32>
      %61 = vector.broadcast %60 : vector<32x1xf32> to vector<32x128xf32>
      %62 = arith.addf %59, %61 : vector<32x128xf32>
      %cst_41 = arith.constant 0.000000e+00 : f32
      %63 = vector.broadcast %cst_41 : f32 to vector<32x128xf32>
      %64 = arith.maximumf %62, %63 : vector<32x128xf32>
      %c0_42 = arith.constant 0 : index
      %c0_43 = arith.constant 0 : index
      %65 = vector.load %arg17[%c0_42, %c0_43] : memref<2x32xf32, #tpu.memory_space<vmem>>, vector<2x32xf32>
      %cst_44 = arith.constant dense<0.000000e+00> : vector<2x128xf32>
      %66 = tpu.matmul %65, %64, %cst_44 {dimension_numbers = #tpu.dot_dimension_numbers<[1], [0], [0], [1], [0, 0, 1, 1], [], []>} : vector<2x32xf32>, vector<32x128xf32>, vector<2x128xf32> -> vector<2x128xf32>
      %c0_45 = arith.constant 0 : index
      %c0_46 = arith.constant 0 : index
      %67 = vector.load %arg18[%c0_45, %c0_46] : memref<2x1xf32, #tpu.memory_space<vmem>>, vector<2x1xf32>
      %68 = vector.broadcast %67 : vector<2x1xf32> to vector<2x128xf32>
      %69 = arith.addf %66, %68 : vector<2x128xf32>
      %c0_47 = arith.constant 0 : index
      %c0_48 = arith.constant 0 : index
      %70 = vector.load %arg19[%c0_47, %c0_48] : memref<2x128xf32, #tpu.memory_space<vmem>>, vector<2x128xf32>
      tpu.vector_store %arg19[%c0_47, %c0_48], %69 {strides = array<i32>} : memref<2x128xf32, #tpu.memory_space<vmem>>, vector<2x128xf32>,
    } else {
    }
    return
  }
  func.func @transform_0(%arg0: i32, %arg1: i32, %arg2: memref<1xi32, #tpu.memory_space<smem>>, %arg3: memref<1xi32, #tpu.memory_space<smem>>) -> (i32, i32) {
    %c0_i32 = arith.constant 0 : i32
    %c0_i32_0 = arith.constant 0 : i32
    return %arg1, %c0_i32 : i32, i32
  }
  func.func @transform_1(%arg0: i32, %arg1: i32, %arg2: memref<1xi32, #tpu.memory_space<smem>>, %arg3: memref<1xi32, #tpu.memory_space<smem>>) -> (i32, i32) {
    %c0_i32 = arith.constant 0 : i32
    %c0_i32_0 = arith.constant 0 : i32
    return %arg1, %c0_i32 : i32, i32
  }
  func.func @transform_2(%arg0: i32, %arg1: i32, %arg2: memref<1xi32, #tpu.memory_space<smem>>, %arg3: memref<1xi32, #tpu.memory_space<smem>>) -> (i32, i32) {
    %c0_i32 = arith.constant 0 : i32
    %c0_i32_0 = arith.constant 0 : i32
    return %c0_i32, %arg1 : i32, i32
  }
  func.func @transform_3(%arg0: i32, %arg1: i32, %arg2: memref<1xi32, #tpu.memory_space<smem>>, %arg3: memref<1xi32, #tpu.memory_space<smem>>) -> (i32, i32) {
    %c0_i32 = arith.constant 0 : i32
    %c0_i32_0 = arith.constant 0 : i32
    %c0_i32_1 = arith.constant 0 : i32
    return %c0_i32, %c0_i32_0 : i32, i32
  }
  func.func @transform_4(%arg0: i32, %arg1: i32, %arg2: memref<1xi32, #tpu.memory_space<smem>>, %arg3: memref<1xi32, #tpu.memory_space<smem>>) -> (i32, i32) {
    %c0_i32 = arith.constant 0 : i32
    %c0_i32_0 = arith.constant 0 : i32
    %c0_i32_1 = arith.constant 0 : i32
    return %c0_i32, %c0_i32_0 : i32, i32
  }
  func.func @transform_5(%arg0: i32, %arg1: i32, %arg2: memref<1xi32, #tpu.memory_space<smem>>, %arg3: memref<1xi32, #tpu.memory_space<smem>>) -> (i32, i32) {
    %c0_i32 = arith.constant 0 : i32
    %c0_i32_0 = arith.constant 0 : i32
    %c0_i32_1 = arith.constant 0 : i32
    return %c0_i32, %c0_i32_0 : i32, i32
  }
  func.func @transform_6(%arg0: i32, %arg1: i32, %arg2: memref<1xi32, #tpu.memory_space<smem>>, %arg3: memref<1xi32, #tpu.memory_space<smem>>) -> (i32, i32) {
    %c0_i32 = arith.constant 0 : i32
    %c0_i32_0 = arith.constant 0 : i32
    %c0_i32_1 = arith.constant 0 : i32
    return %c0_i32, %c0_i32_0 : i32, i32
  }
  func.func @transform_7(%arg0: i32, %arg1: i32, %arg2: memref<1xi32, #tpu.memory_space<smem>>, %arg3: memref<1xi32, #tpu.memory_space<smem>>) -> (i32, i32) {
    %c0_i32 = arith.constant 0 : i32
    %c0_i32_0 = arith.constant 0 : i32
    %c0_i32_1 = arith.constant 0 : i32
    return %c0_i32, %c0_i32_0 : i32, i32
  }
  func.func @transform_8(%arg0: i32, %arg1: i32, %arg2: memref<1xi32, #tpu.memory_space<smem>>, %arg3: memref<1xi32, #tpu.memory_space<smem>>) -> (i32, i32) {
    %c0_i32 = arith.constant 0 : i32
    %c0_i32_0 = arith.constant 0 : i32
    %c0_i32_1 = arith.constant 0 : i32
    return %c0_i32, %c0_i32_0 : i32, i32
  }
  func.func @transform_9(%arg0: i32, %arg1: i32, %arg2: memref<1xi32, #tpu.memory_space<smem>>, %arg3: memref<1xi32, #tpu.memory_space<smem>>) -> (i32, i32) {
    %c0_i32 = arith.constant 0 : i32
    %c0_i32_0 = arith.constant 0 : i32
    %c0_i32_1 = arith.constant 0 : i32
    return %c0_i32, %c0_i32_0 : i32, i32
  }
  func.func @transform_10(%arg0: i32, %arg1: i32, %arg2: memref<1xi32, #tpu.memory_space<smem>>, %arg3: memref<1xi32, #tpu.memory_space<smem>>) -> (i32, i32) {
    %c0_i32 = arith.constant 0 : i32
    %c0_i32_0 = arith.constant 0 : i32
    %c0_i32_1 = arith.constant 0 : i32
    return %c0_i32, %c0_i32_0 : i32, i32
  }
  func.func @transform_11(%arg0: i32, %arg1: i32, %arg2: memref<1xi32, #tpu.memory_space<smem>>, %arg3: memref<1xi32, #tpu.memory_space<smem>>) -> (i32, i32) {
    %c0_i32 = arith.constant 0 : i32
    %c0_i32_0 = arith.constant 0 : i32
    %c0_i32_1 = arith.constant 0 : i32
    return %c0_i32, %c0_i32_0 : i32, i32
  }
  func.func @transform_12(%arg0: i32, %arg1: i32, %arg2: memref<1xi32, #tpu.memory_space<smem>>, %arg3: memref<1xi32, #tpu.memory_space<smem>>) -> (i32, i32) {
    %c0_i32 = arith.constant 0 : i32
    %c0_i32_0 = arith.constant 0 : i32
    %c0_i32_1 = arith.constant 0 : i32
    return %c0_i32, %c0_i32_0 : i32, i32
  }
  func.func @transform_13(%arg0: i32, %arg1: i32, %arg2: memref<1xi32, #tpu.memory_space<smem>>, %arg3: memref<1xi32, #tpu.memory_space<smem>>) -> (i32, i32) {
    %c0_i32 = arith.constant 0 : i32
    %c0_i32_0 = arith.constant 0 : i32
    %c0_i32_1 = arith.constant 0 : i32
    return %c0_i32, %c0_i32_0 : i32, i32
  }
  func.func @transform_14(%arg0: i32, %arg1: i32, %arg2: memref<1xi32, #tpu.memory_space<smem>>, %arg3: memref<1xi32, #tpu.memory_space<smem>>) -> (i32, i32) {
    %c0_i32 = arith.constant 0 : i32
    %c0_i32_0 = arith.constant 0 : i32
    %c0_i32_1 = arith.constant 0 : i32
    return %c0_i32, %c0_i32_0 : i32, i32
  }
  func.func @transform_15(%arg0: i32, %arg1: i32, %arg2: memref<1xi32, #tpu.memory_space<smem>>, %arg3: memref<1xi32, #tpu.memory_space<smem>>) -> (i32, i32) {
    %c0_i32 = arith.constant 0 : i32
    %c0_i32_0 = arith.constant 0 : i32
    return %c0_i32, %arg0 : i32, i32
  }
}

</mosaic_0001>

<bundles_post_ra>
// kernel: tpu_custom_call.1
= control target key start
LH: loop header
LB: loop body
LE: loop exit
PB: predicated region body
PF: predicated region fallthrough
CT: control target
= control target key end

     0   :  { %s3142_s0 = inlined_call_operand.<no memory space> [shape: s32[1], index: 0, kind: input, shape index: {}]   ;;  %s3143_s1 = inlined_call_operand.<no memory space> [shape: s32[1], index: 1, kind: input, shape index: {}]   ;;  %s3144_s2 = inlined_call_operand.vmem [shape: s32[128,1], index: 2, kind: input, shape index: {}]   ;;  %s3145_s3 = inlined_call_operand.vmem [shape: f32[128,5], index: 3, kind: input, shape index: {}]   ;;  %s3146_s4 = inlined_call_operand.vmem [shape: f32[8,128], index: 4, kind: input, shape index: {}]   ;;  %s3147_s5 = inlined_call_operand.vmem [shape: f32[32,8], index: 5, kind: input, shape index: {}]   ;;  %s3148_s6 = inlined_call_operand.vmem [shape: f32[32,5], index: 6, kind: input, shape index: {}]   ;;  %s3149_s7 = inlined_call_operand.vmem [shape: f32[32,5], index: 7, kind: input, shape index: {}]   ;;  %s3150_s8 = inlined_call_operand.vmem [shape: f32[32,1], index: 8, kind: input, shape index: {}]   ;;  %s3151_s9 = inlined_call_operand.vmem [shape: f32[32,32], index: 9, kind: input, shape index: {}]   ;;  %s3152_s10 = inlined_call_operand.vmem [shape: f32[32,1], index: 10, kind: input, shape index: {}]   ;;  %s3153_s11 = inlined_call_operand.vmem [shape: f32[32,32], index: 11, kind: input, shape index: {}]   ;;  %s3154_s12 = inlined_call_operand.vmem [shape: f32[32,1], index: 12, kind: input, shape index: {}]   ;;  %s3155_s13 = inlined_call_operand.vmem [shape: f32[32,32], index: 13, kind: input, shape index: {}]   ;;  %s3156_s14 = inlined_call_operand.vmem [shape: f32[32,1], index: 14, kind: input, shape index: {}]   ;;  %s3157_s15 = inlined_call_operand.vmem [shape: f32[2,32], index: 15, kind: input, shape index: {}]   ;;  %s3158_s16 = inlined_call_operand.vmem [shape: f32[2,1], index: 16, kind: input, shape index: {}]   ;;  %s3159_s17 = inlined_call_operand.hbm [shape: f32[2,128], index: 17, kind: output, shape index: {}]  }
   0x1   :  { %3163 = sst [smem:[#allocation11_spill]] %s3142_s0 }
   0x2   :  { %3164 = sst [smem:[#allocation12_spill]] %s3143_s1 }
   0x3   :  { %24 = vsyncpa [#allocation9], 0  ;;  %s3165_s26 = sld [smem:[#allocation12_spill]]  ;;  %v3160_v0 = vmov 0.0   ;;  %v2162_v1 = vmov inf   ;;  %v2163_v2 = vmov -inf  }
   0x4   :  { %59 = vst [vmem:[#allocation2] sm:$0xff] %v3160_v0  ;;  %60 = vst [vmem:[#allocation3] sm:$0x1f] %v2162_v1  ;;  %s3166_s29 = sld [smem:[#allocation11_spill]] }
   0x5   :  { %61 = vst [vmem:[#allocation4] sm:$0x1f] %v2163_v2 }
   0x9   :  { %p64_p0 = scmp.ge.s32.totalorder %s3165_s26, 0 }
   0xa   :  { %p67_p1 = scmp.lt.s32.totalorder %s3166_s29, 128 }
   0xc   :  { %p68_p2 = pnand %p67_p1, %p64_p0 }
   0xe   :  { %71 = sbr.rel (%p68_p2) target bundleno = 402 (0x192), region = 69 }
  0x13   :  { %v78_v3 = vld [vmem:[%s3144_s2 + $0x10] sm:$0xff]  ;;  %v76_v4 = vld [vmem:[%s3144_s2] sm:$0xff]  ;;  %v2164_v5 = vmov 0   ;;  %v79_v6 = vld [vmem:[%s3144_s2 + $0x18] sm:$0xff]  ;;  %v2165_v20 = vmov 0.0   ;;  %vm2166_vm0 = vmmov 0   ;;  %v72_v52 = vlaneseq }
  0x14   :  { %2124 = vset.pattern.permute.xlu1 %v2164_v5  ;;  %2123 = vset.pattern.permute.xlu0 %v2164_v5  ;;  %v77_v7 = vld [vmem:[%s3144_s2 + $0x8] sm:$0xff]  ;;  %v80_v9 = vld [vmem:[%s3144_s2 + $0x20] sm:$0xff]  ;;  %v83_v10 = vld [vmem:[%s3144_s2 + $0x38] sm:$0xff]  ;;  %v2167_v37 = vmov 1   ;;  %v2168_v38 = vmov 2   ;;  %v3162_v41 = vmov 3  }
  0x15   :  { %99 = vperm.xlu1 %2124, %v78_v3   ;;  %93 = vperm.xlu0 %2123, %v76_v4   ;;  %v81_v8 = vld [vmem:[%s3144_s2 + $0x28] sm:$0xff]  ;;  %v82_v11 = vld [vmem:[%s3144_s2 + $0x30] sm:$0xff]  ;;  %v84_v13 = vld [vmem:[%s3144_s2 + $0x40] sm:$0xff]  ;;  %v2491_v55 = vand.u32 127, %v72_v52  ;;  %v2170_v58 = vmov 1.0   ;;  %v2171_v59 = vmov 4  }
  0x16   :  { %v85_v12 = vld [vmem:[%s3144_s2 + $0x48] sm:$0xff]  ;;  %v87_v14 = vld [vmem:[%s3144_s2 + $0x58] sm:$0xff]  ;;  %v86_v15 = vld [vmem:[%s3144_s2 + $0x50] sm:$0xff]  ;;  %1996 = vmatprep.subr.mxu0 %v2165_v20  ;;  %2028 = vmatprep.mubr.msk.f32.mxu0 %vm2166_vm0, %v2165_v20  ;;  %v2172_v5 = vmov inf  }
  0x17   :  { %v89_v16 = vld [vmem:[%s3144_s2 + $0x68] sm:$0xff]  ;;  %v88_v17 = vld [vmem:[%s3144_s2 + $0x60] sm:$0xff]  ;;  %v91_v18 = vld [vmem:[%s3144_s2 + $0x78] sm:$0xff] }
  0x18   :  { %v90_v19 = vld [vmem:[%s3144_s2 + $0x70] sm:$0xff]  ;;  %v2325_v21 = vld [vmem:[%s3145_s3 + $0x8] sm:$0xff]  ;;  %v2330_v22 = vld [vmem:[%s3145_s3] sm:$0xff] }
  0x19   :  { %102 = vperm.xlu1 %2124, %v79_v6   ;;  %96 = vperm.xlu0 %2123, %v77_v7   ;;  %v2337_v23 = vld [vmem:[%s3145_s3 + $0x18] sm:$0xff]  ;;  %v2342_v24 = vld [vmem:[%s3145_s3 + $0x10] sm:$0xff]  ;;  %v2349_v25 = vld [vmem:[%s3145_s3 + $0x28] sm:$0xff] }
  0x1a   :  { %v2354_v26 = vld [vmem:[%s3145_s3 + $0x20] sm:$0xff]  ;;  %v2361_v27 = vld [vmem:[%s3145_s3 + $0x38] sm:$0xff]  ;;  %v2366_v28 = vld [vmem:[%s3145_s3 + $0x30] sm:$0xff] }
  0x1b   :  { %v2373_v29 = vld [vmem:[%s3145_s3 + $0x48] sm:$0xff]  ;;  %v2378_v30 = vld [vmem:[%s3145_s3 + $0x40] sm:$0xff]  ;;  %v2385_v31 = vld [vmem:[%s3145_s3 + $0x58] sm:$0xff] }
  0x1c   :  { %v2390_v32 = vld [vmem:[%s3145_s3 + $0x50] sm:$0xff]  ;;  %v2397_v33 = vld [vmem:[%s3145_s3 + $0x68] sm:$0xff]  ;;  %v2402_v34 = vld [vmem:[%s3145_s3 + $0x60] sm:$0xff] }
  0x1d   :  { %108 = vperm.xlu1 %2124, %v81_v8   ;;  %105 = vperm.xlu0 %2123, %v80_v9   ;;  %v2409_v35 = vld [vmem:[%s3145_s3 + $0x78] sm:$0xff]  ;;  %v2414_v36 = vld [vmem:[%s3145_s3 + $0x70] sm:$0xff] }
  0x21   :  { %114 = vperm.xlu1 %2124, %v83_v10   ;;  %111 = vperm.xlu0 %2123, %v82_v11  }
  0x25   :  { %120 = vperm.xlu1 %2124, %v85_v12   ;;  %117 = vperm.xlu0 %2123, %v84_v13  }
  0x29   :  { %126 = vperm.xlu1 %2124, %v87_v14   ;;  %123 = vperm.xlu0 %2123, %v86_v15  }
  0x2d   :  { %132 = vperm.xlu1 %2124, %v89_v16   ;;  %129 = vperm.xlu0 %2123, %v88_v17  }
  0x31   :  { %138 = vperm.xlu1 %2124, %v91_v18   ;;  %135 = vperm.xlu0 %2123, %v90_v19  }
  0x35   :  { %301 = vperm.xlu1 %2124, %v2325_v21   ;;  %296 = vperm.xlu0 %2123, %v2330_v22  }
  0x39   :  { %311 = vperm.xlu1 %2124, %v2337_v23   ;;  %306 = vperm.xlu0 %2123, %v2342_v24  }
  0x3d   :  { %321 = vperm.xlu1 %2124, %v2349_v25   ;;  %316 = vperm.xlu0 %2123, %v2354_v26  }
  0x41   :  { %331 = vperm.xlu1 %2124, %v2361_v27   ;;  %326 = vperm.xlu0 %2123, %v2366_v28  }
  0x45   :  { %341 = vperm.xlu1 %2124, %v2373_v29   ;;  %336 = vperm.xlu0 %2123, %v2378_v30  }
  0x49   :  { %351 = vperm.xlu1 %2124, %v2385_v31   ;;  %346 = vperm.xlu0 %2123, %v2390_v32  }
  0x4d   :  { %361 = vperm.xlu1 %2124, %v2397_v33   ;;  %356 = vperm.xlu0 %2123, %v2402_v34  }
  0x51   :  { %371 = vperm.xlu1 %2124, %v2409_v35   ;;  %366 = vperm.xlu0 %2123, %v2414_v36  }
  0x55   :  { %2126 = vset.pattern.permute.xlu1 %v2167_v37  ;;  %2125 = vset.pattern.permute.xlu0 %v2167_v37 }
  0x56   :  { %459 = vperm.xlu1 %2126, %v2325_v21   ;;  %455 = vperm.xlu0 %2125, %v2330_v22  }
  0x5a   :  { %463 = vperm.xlu1 %2126, %v2342_v24   ;;  %467 = vperm.xlu0 %2125, %v2337_v23  }
  0x5e   :  { %471 = vperm.xlu1 %2126, %v2354_v26   ;;  %475 = vperm.xlu0 %2125, %v2349_v25  }
  0x62   :  { %479 = vperm.xlu1 %2126, %v2366_v28   ;;  %483 = vperm.xlu0 %2125, %v2361_v27  }
  0x66   :  { %487 = vperm.xlu1 %2126, %v2378_v30   ;;  %491 = vperm.xlu0 %2125, %v2373_v29  }
  0x6a   :  { %495 = vperm.xlu1 %2126, %v2390_v32   ;;  %499 = vperm.xlu0 %2125, %v2385_v31  }
  0x6e   :  { %503 = vperm.xlu1 %2126, %v2402_v34   ;;  %507 = vperm.xlu0 %2125, %v2397_v33  }
  0x72   :  { %511 = vperm.xlu1 %2126, %v2414_v36   ;;  %515 = vperm.xlu0 %2125, %v2409_v35  }
  0x76   :  { %2127 = vset.pattern.permute.xlu1 %v2168_v38  ;;  %2128 = vset.pattern.permute.xlu0 %v2168_v38 }
  0x77   :  { %599 = vperm.xlu1 %2127, %v2330_v22   ;;  %603 = vperm.xlu0 %2128, %v2325_v21  }
  0x7b   :  { %607 = vperm.xlu1 %2127, %v2342_v24   ;;  %615 = vperm.xlu0 %2128, %v2354_v26  }
  0x7f   :  { %611 = vperm.xlu1 %2127, %v2337_v23   ;;  %623 = vperm.xlu0 %2128, %v2366_v28  }
  0x83   :  { %619 = vperm.xlu1 %2127, %v2349_v25   ;;  %631 = vperm.xlu0 %2128, %v2378_v30  }
  0x87   :  { %627 = vperm.xlu1 %2127, %v2361_v27   ;;  %639 = vperm.xlu0 %2128, %v2390_v32  }
  0x8b   :  { %635 = vperm.xlu1 %2127, %v2373_v29   ;;  %647 = vperm.xlu0 %2128, %v2402_v34  }
  0x8f   :  { %643 = vperm.xlu1 %2127, %v2385_v31   ;;  %655 = vperm.xlu0 %2128, %v2414_v36  }
  0x90   :  { %v2449_v39 = vpop.permute.xlu1 %99  ;;  %v2451_v40 = vpop.permute.xlu0 %93 }
  0x91   :  { %vm142_vm7 = vcmp.eq.s32.totalorder %v2449_v39, %v2491_v55  ;;  %vm140_vm8 = vcmp.eq.s32.totalorder %v2451_v40, %v2491_v55 }
  0x92   :  { %v2583_v6 = vsel %vm142_vm7, 0.0, %v2172_v5  ;;  %v2595_v7 = vsel %vm140_vm8, 0.0, %v2172_v5 }
  0x93   :  { %651 = vperm.xlu1 %2127, %v2397_v33   ;;  %2129 = vset.pattern.permute.xlu0 %v3162_v41 }
  0x94   :  { %v2455_v42 = vpop.permute.xlu1 %102  ;;  %743 = vperm.xlu0 %2129, %v2330_v22   ;;  %v2458_v43 = vpop.permute.xlu0 %96 }
  0x95   :  { %vm143_vm9 = vcmp.eq.s32.totalorder %v2455_v42, %v2491_v55  ;;  %vm141_vm10 = vcmp.eq.s32.totalorder %v2458_v43, %v2491_v55 }
  0x96   :  { %v2601_v8 = vsel %vm143_vm9, 0.0, %v2172_v5  ;;  %v2607_v9 = vsel %vm141_vm10, 0.0, %v2172_v5 }
  0x97   :  { %659 = vperm.xlu1 %2127, %v2409_v35  }
  0x98   :  { %v2461_v44 = vpop.permute.xlu1 %108  ;;  %755 = vperm.xlu0 %2129, %v2337_v23   ;;  %v2464_v45 = vpop.permute.xlu0 %105 }
  0x99   :  { %vm145_vm11 = vcmp.eq.s32.totalorder %v2461_v44, %v2491_v55  ;;  %vm144_vm12 = vcmp.eq.s32.totalorder %v2464_v45, %v2491_v55 }
  0x9a   :  { %v2613_v10 = vsel %vm145_vm11, 0.0, %v2172_v5  ;;  %v2621_v11 = vsel %vm144_vm12, 0.0, %v2172_v5 }
  0x9b   :  { %2130 = vset.pattern.permute.xlu1 %v3162_v41 }
  0x9c   :  { %747 = vperm.xlu1 %2130, %v2325_v21   ;;  %v2468_v46 = vpop.permute.xlu1 %114  ;;  %763 = vperm.xlu0 %2129, %v2349_v25   ;;  %v2471_v47 = vpop.permute.xlu0 %111 }
  0x9d   :  { %vm147_vm13 = vcmp.eq.s32.totalorder %v2468_v46, %v2491_v55  ;;  %vm146_vm14 = vcmp.eq.s32.totalorder %v2471_v47, %v2491_v55 }
  0x9e   :  { %v2627_v12 = vsel %vm147_vm13, 0.0, %v2172_v5  ;;  %v2633_v13 = vsel %vm146_vm14, 0.0, %v2172_v5 }
  0xa0   :  { %751 = vperm.xlu1 %2130, %v2342_v24   ;;  %v2474_v48 = vpop.permute.xlu1 %120  ;;  %771 = vperm.xlu0 %2129, %v2361_v27   ;;  %v2477_v49 = vpop.permute.xlu0 %117 }
  0xa1   :  { %vm149_vm15 = vcmp.eq.s32.totalorder %v2474_v48, %v2491_v55  ;;  %vm148_vm0 = vcmp.eq.s32.totalorder %v2477_v49, %v2491_v55 }
  0xa2   :  { %v2639_v14 = vsel %vm149_vm15, 0.0, %v2172_v5  ;;  %v2643_v15 = vsel %vm148_vm0, 0.0, %v2172_v5 }
  0xa4   :  { %759 = vperm.xlu1 %2130, %v2354_v26   ;;  %v2480_v50 = vpop.permute.xlu1 %126  ;;  %779 = vperm.xlu0 %2129, %v2373_v29   ;;  %v2483_v51 = vpop.permute.xlu0 %123 }
  0xa5   :  { %vm151_vm5 = vcmp.eq.s32.totalorder %v2480_v50, %v2491_v55  ;;  %vm150_vm6 = vcmp.eq.s32.totalorder %v2483_v51, %v2491_v55 }
  0xa8   :  { %767 = vperm.xlu1 %2130, %v2366_v28   ;;  %v2486_v53 = vpop.permute.xlu1 %132  ;;  %783 = vperm.xlu0 %2129, %v2390_v32   ;;  %v2489_v54 = vpop.permute.xlu0 %129 }
  0xa9   :  { %vm153_vm3 = vcmp.eq.s32.totalorder %v2486_v53, %v2491_v55  ;;  %vm152_vm4 = vcmp.eq.s32.totalorder %v2489_v54, %v2491_v55 }
  0xaa   :  { %v2728_v53 = vsel %vm152_vm4, 0.0, %v2172_v5 }
  0xac   :  { %775 = vperm.xlu1 %2130, %v2378_v30   ;;  %v2494_v56 = vpop.permute.xlu1 %138  ;;  %791 = vperm.xlu0 %2129, %v2402_v34   ;;  %v2497_v57 = vpop.permute.xlu0 %135 }
  0xad   :  { %vm155_vm1 = vcmp.eq.s32.totalorder %v2494_v56, %v2491_v55  ;;  %vm154_vm2 = vcmp.eq.s32.totalorder %v2497_v57, %v2491_v55 }
  0xae   :  { %1997 = vmatpush3.msk.msra.mxu0 %vm155_vm1, %v2170_v58  ;;  %v2738_v45 = vsel %vm155_vm1, 0.0, %v2172_v5 }
  0xaf   :  { %1998 = vmatprep.subr.mxu0 %v2165_v20 }
  0xb0   :  { %2131 = vset.pattern.permute.xlu1 %v2171_v59  ;;  %v2509_v60 = vpop.permute.xlu1 %301  ;;  %803 = vperm.xlu0 %2129, %v2409_v35   ;;  %v2512_v61 = vpop.permute.xlu0 %296 }
  0xb1   :  { %1999 = vmatpush3.msk.msra.mxu0 %vm154_vm2, %v2170_v58  ;;  %887 = vperm.xlu1 %2131, %v2330_v22   ;;  %v2647_v16 = vadd.f32 %v2509_v60, %v2607_v9  ;;  %v412_v22 = vsub.f32 %v2509_v60, %v2607_v9  ;;  %v411_v37 = vsub.f32 %v2512_v61, %v2595_v7 }
  0xb2   :  { %2000 = vmatprep.subr.mxu0 %v2165_v20 }
  0xb3   :  { %2001 = vmatpush3.msk.msra.mxu0 %vm153_vm3, %v2170_v58 }
  0xb4   :  { %2002 = vmatprep.subr.mxu0 %v2165_v20  ;;  %v2529_v62 = vpop.permute.xlu1 %311  ;;  %2135 = vset.pattern.permute.xlu0 %v2171_v59  ;;  %v2532_v63 = vpop.permute.xlu0 %306 }
  0xb5   :  { %2003 = vmatpush3.msk.msra.mxu0 %vm152_vm4, %v2170_v58  ;;  %895 = vperm.xlu1 %2131, %v2342_v24   ;;  %v377_v46 = vadd.f32 %v2529_v62, %v2601_v8  ;;  %v414_v48 = vsub.f32 %v2529_v62, %v2601_v8  ;;  %v376_v49 = vadd.f32 %v2532_v63, %v2583_v6 }
  0xb6   :  { %891 = vperm.xlu0 %2135, %v2325_v21   ;;  %2004 = vmatprep.subr.mxu0 %v2165_v20  ;;  %v413_v50 = vsub.f32 %v2532_v63, %v2583_v6 }
  0xb7   :  { %2005 = vmatpush3.msk.msra.mxu0 %vm151_vm5, %v2170_v58 }
  0xb8   :  { %v322_v1 = vpop.permute.xlu1 %321  ;;  %v2547_v2 = vpop.permute.xlu0 %316  ;;  %2006 = vmatprep.subr.mxu0 %v2165_v20 }
  0xb9   :  { %2007 = vmatpush3.msk.msra.mxu0 %vm150_vm6, %v2170_v58  ;;  %899 = vperm.xlu1 %2131, %v2337_v23   ;;  %v379_v17 = vadd.f32 %v322_v1, %v2613_v10  ;;  %v416_v18 = vsub.f32 %v322_v1, %v2613_v10  ;;  %v378_v23 = vadd.f32 %v2547_v2, %v2621_v11 }
  0xba   :  { %903 = vperm.xlu0 %2135, %v2354_v26   ;;  %2008 = vmatprep.subr.mxu0 %v2165_v20  ;;  %v415_v24 = vsub.f32 %v2547_v2, %v2621_v11  ;;  %v2668_v26 = vsel %vm151_vm5, 0.0, %v2172_v5 }
  0xbb   :  { %2009 = vmatpush3.msk.msra.mxu0 %vm149_vm15, %v2170_v58  ;;  %v391_v52 = vmin.f32 %v2647_v16, %v379_v17  ;;  %v428_v60 = vmax.f32 %v412_v22, %v416_v18 }
  0xbc   :  { %v332_v3 = vpop.permute.xlu1 %331  ;;  %v2577_v4 = vpop.permute.xlu0 %326  ;;  %2010 = vmatprep.subr.mxu0 %v2165_v20  ;;  %v427_v1 = vmax.f32 %v411_v37, %v415_v24 }
  0xbd   :  { %907 = vperm.xlu1 %2131, %v2349_v25   ;;  %2011 = vmatpush3.msk.msra.mxu0 %vm148_vm0, %v2170_v58  ;;  %v381_v25 = vadd.f32 %v332_v3, %v2627_v12  ;;  %v418_v38 = vsub.f32 %v332_v3, %v2627_v12  ;;  %v417_v51 = vsub.f32 %v2577_v4, %v2633_v13 }
  0xbe   :  { %911 = vperm.xlu0 %2135, %v2366_v28   ;;  %2012 = vmatprep.subr.mxu0 %v2165_v20  ;;  %v374_v28 = vadd.f32 %v2512_v61, %v2595_v7  ;;  %v380_v61 = vadd.f32 %v2577_v4, %v2633_v13 }
  0xbf   :  { %2013 = vmatpush3.msk.msra.mxu0 %vm147_vm13, %v2170_v58  ;;  %v393_v2 = vmin.f32 %v377_v46, %v381_v25  ;;  %v430_v3 = vmax.f32 %v414_v48, %v418_v38  ;;  %v429_v38 = vmax.f32 %v413_v50, %v417_v51 }
  0xc0   :  { %v342_v19 = vpop.permute.xlu1 %341  ;;  %v337_v21 = vpop.permute.xlu0 %336  ;;  %2014 = vmatprep.subr.mxu0 %v2165_v20  ;;  %v390_v47 = vmin.f32 %v374_v28, %v378_v23 }
  0xc1   :  { %915 = vperm.xlu1 %2131, %v2361_v27   ;;  %2015 = vmatpush3.msk.msra.mxu0 %vm146_vm14, %v2170_v58  ;;  %v2693_v27 = vsel %vm150_vm6, 0.0, %v2172_v5  ;;  %v383_v16 = vadd.f32 %v342_v19, %v2639_v14  ;;  %v420_v17 = vsub.f32 %v342_v19, %v2639_v14  ;;  %v382_v4 = vadd.f32 %v337_v21, %v2643_v15 }
  0xc2   :  { %923 = vperm.xlu0 %2135, %v2373_v29   ;;  %2016 = vmatprep.subr.mxu0 %v2165_v20  ;;  %v2710_v29 = vsel %vm153_vm3, 0.0, %v2172_v5  ;;  %v419_v44 = vsub.f32 %v337_v21, %v2643_v15  ;;  %v392_v19 = vmin.f32 %v376_v49, %v380_v61 }
  0xc3   :  { %2017 = vmatpush3.msk.msra.mxu0 %vm145_vm11, %v2170_v58  ;;  %v395_v46 = vmin.f32 %v391_v52, %v383_v16  ;;  %v432_v48 = vmax.f32 %v428_v60, %v420_v17  ;;  %v394_v49 = vmin.f32 %v390_v47, %v382_v4  ;;  %v2759_v60 = vsel %vm154_vm2, 0.0, %v2172_v5 }
  0xc4   :  { %v352_v62 = vpop.permute.xlu1 %351  ;;  %v347_v63 = vpop.permute.xlu0 %346  ;;  %2018 = vmatprep.subr.mxu0 %v2165_v20  ;;  %v431_v61 = vmax.f32 %v427_v1, %v419_v44 }
  0xc5   :  { %2132 = vset.pattern.permute.xlu1 %v3162_v41  ;;  %v385_v18 = vadd.f32 %v352_v62, %v2668_v26  ;;  %v422_v22 = vsub.f32 %v352_v62, %v2668_v26  ;;  %2019 = vmatpush3.msk.msra.mxu0 %vm144_vm12, %v2170_v58  ;;  %v384_v23 = vadd.f32 %v347_v63, %v2693_v27 }
  0xc6   :  { %v421_v21 = vsub.f32 %v347_v63, %v2693_v27  ;;  %939 = vperm.xlu0 %2135, %v2397_v33   ;;  %2020 = vmatprep.subr.mxu0 %v2165_v20 }
  0xc7   :  { %787 = vperm.xlu1 %2132, %v2385_v31   ;;  %2021 = vmatpush3.msk.msra.mxu0 %vm143_vm9, %v2170_v58  ;;  %v397_v62 = vmin.f32 %v393_v2, %v385_v18  ;;  %v434_v63 = vmax.f32 %v430_v3, %v422_v22  ;;  %v396_v42 = vmin.f32 %v392_v19, %v384_v23  ;;  %v189_v2 = vld [vmem:[%s3146_s4] sm:$0xff] }
  0xc8   :  { %v362_v24 = vpop.permute.xlu1 %361  ;;  %v357_v25 = vpop.permute.xlu0 %356  ;;  %2022 = vmatprep.subr.mxu0 %v2165_v20 }
  0xc9   :  { %v387_v54 = vadd.f32 %v362_v24, %v2710_v29  ;;  %v424_v28 = vsub.f32 %v362_v24, %v2710_v29  ;;  %v386_v37 = vadd.f32 %v357_v25, %v2728_v53  ;;  %v423_v56 = vsub.f32 %v357_v25, %v2728_v53  ;;  %2023 = vmatpush3.msk.msra.mxu0 %vm142_vm7, %v2170_v58 }
  0xca   :  { %v433_v24 = vmax.f32 %v429_v38, %v421_v21  ;;  %2024 = vmatprep.subr.mxu0 %v2165_v20  ;;  %v3167_v38 = vmov 3  }
  0xcb   :  { %v399_v0 = vmin.f32 %v395_v46, %v387_v54  ;;  %v436_v41 = vmax.f32 %v432_v48, %v424_v28  ;;  %v398_v47 = vmin.f32 %v394_v49, %v386_v37  ;;  %2133 = vset.pattern.permute.xlu1 %v2171_v59  ;;  %2025 = vmatpush3.msk.msra.mxu0 %vm141_vm10, %v2170_v58 }
  0xcc   :  { %v372_v50 = vpop.permute.xlu1 %371  ;;  %v367_v52 = vpop.permute.xlu0 %366  ;;  %v435_v51 = vmax.f32 %v431_v61, %v423_v56  ;;  %919 = vperm.xlu1 %2133, %v2378_v30   ;;  %2026 = vmatprep.subr.mxu0 %v2165_v20 }
  0xcd   :  { %v389_v39 = vadd.f32 %v372_v50, %v2738_v45  ;;  %v426_v1 = vsub.f32 %v372_v50, %v2738_v45  ;;  %v388_v57 = vadd.f32 %v367_v52, %v2759_v60  ;;  %v425_v5 = vsub.f32 %v367_v52, %v2759_v60  ;;  %2027 = vmatpush3.msk.msra.mxu0 %vm140_vm8, %v2170_v58 }
  0xce   :  { %2029 = vmatmul.mubr.f32.vlgmr.msra.gmra.mxu0 %v189_v2  ;;  %v402_v18 = vmin.f32 %v398_v47, %v399_v0  ;;  %v439_v30 = vmax.f32 %v435_v51, %v436_v41 }
  0xcf   :  { %v401_v3 = vmin.f32 %v397_v62, %v389_v39  ;;  %v438_v43 = vmax.f32 %v434_v63, %v426_v1  ;;  %v400_v16 = vmin.f32 %v396_v42, %v388_v57  ;;  %v437_v17 = vmax.f32 %v433_v24, %v425_v5  ;;  %v448_v62 = vld [vmem:[#allocation3] sm:$0x1]  ;;  %v451_v63 = vld [vmem:[#allocation4] sm:$0x1] }
  0xd0   :  { %927 = vperm.xlu1 %2133, %v2390_v32  }
  0xd1   :  { %v460_v4 = vpop.permute.xlu1 %459  ;;  %v456_v44 = vpop.permute.xlu0 %455  ;;  %v403_v22 = vmin.f32 %v400_v16, %v401_v3  ;;  %v440_v20 = vmax.f32 %v437_v17, %v438_v43 }
  0xd2   :  { %v519_v51 = vadd.f32 %v460_v4, %v2607_v9  ;;  %v556_v57 = vsub.f32 %v460_v4, %v2607_v9  ;;  %v518_v5 = vadd.f32 %v456_v44, %v2595_v7  ;;  %v555_v3 = vsub.f32 %v456_v44, %v2595_v7 }
  0xd3   :  { %v404_v19 = vmin.f32 %v402_v18, %v403_v22  ;;  %v441_v23 = vmax.f32 %v439_v30, %v440_v20 }
  0xd4   :  { %931 = vperm.xlu1 %2133, %v2385_v31  }
  0xd5   :  { %v2780_v21 = vpop.permute.xlu1 %463  ;;  %v2782_v25 = vpop.permute.xlu0 %467  ;;  %v405_v54 = vrot.slane %v404_v19, 4  ;;  %v442_v40 = vrot.slane %v441_v23, 4 }
  0xd6   :  { %v520_v43 = vadd.f32 %v2780_v21, %v2583_v6  ;;  %v557_v16 = vsub.f32 %v2780_v21, %v2583_v6  ;;  %v558_v17 = vsub.f32 %v2782_v25, %v2601_v8 }
  0xd7   :  { %v406_v55 = vmin.f32 %v404_v19, %v405_v54  ;;  %v443_v58 = vmax.f32 %v441_v23, %v442_v40 }
  0xd8   :  { %2134 = vset.pattern.permute.xlu1 %v3167_v38 }
  0xd9   :  { %v472_v28 = vpop.permute.xlu1 %471  ;;  %v476_v37 = vpop.permute.xlu0 %475  ;;  %v407_v0 = vrot.slane %v406_v55, 2  ;;  %v444_v41 = vrot.slane %v443_v58, 2  ;;  %795 = vperm.xlu1 %2134, %v2397_v33  }
  0xda   :  { %v522_v39 = vadd.f32 %v472_v28, %v2621_v11  ;;  %v559_v33 = vsub.f32 %v472_v28, %v2621_v11  ;;  %v523_v1 = vadd.f32 %v476_v37, %v2613_v10  ;;  %v560_v2 = vsub.f32 %v476_v37, %v2613_v10 }
  0xdb   :  { %v408_v32 = vmin.f32 %v406_v55, %v407_v0  ;;  %v445_v46 = vmax.f32 %v443_v58, %v444_v41 }
  0xdc   :  { %v534_v30 = vmin.f32 %v518_v5, %v522_v39  ;;  %v571_v22 = vmax.f32 %v555_v3, %v559_v33  ;;  %v535_v20 = vmin.f32 %v519_v51, %v523_v1  ;;  %v572_v19 = vmax.f32 %v556_v57, %v560_v2 }
  0xdd   :  { %v480_v48 = vpop.permute.xlu1 %479  ;;  %v484_v56 = vpop.permute.xlu0 %483  ;;  %v409_v49 = vrot.slane %v408_v32, 1  ;;  %v446_v61 = vrot.slane %v445_v46, 1  ;;  %799 = vperm.xlu1 %2134, %v2414_v36  }
  0xde   :  { %v524_v44 = vadd.f32 %v480_v48, %v2633_v13  ;;  %v525_v23 = vadd.f32 %v484_v56, %v2627_v12  ;;  %v562_v21 = vsub.f32 %v484_v56, %v2627_v12 }
  0xdf   :  { %v410_v31 = vmin.f32 %v408_v32, %v409_v49  ;;  %v447_v42 = vmax.f32 %v445_v46, %v446_v61 }
  0xe0   :  { %v536_v32 = vmin.f32 %v520_v43, %v524_v44  ;;  %v574_v61 = vmax.f32 %v558_v17, %v562_v21 }
  0xe1   :  { %v488_v24 = vpop.permute.xlu1 %487  ;;  %v492_v50 = vpop.permute.xlu0 %491  ;;  %v449_v52 = vmin.f32 %v448_v62, %v410_v31  ;;  %v452_v47 = vmax.f32 %v451_v63, %v447_v42  ;;  %2136 = vset.pattern.permute.xlu1 %v2171_v59  ;;  %v521_v59 = vadd.f32 %v2782_v25, %v2601_v8 }
  0xe2   :  { %935 = vperm.xlu1 %2136, %v2402_v34   ;;  %v561_v34 = vsub.f32 %v480_v48, %v2633_v13  ;;  %v526_v54 = vadd.f32 %v488_v24, %v2643_v15  ;;  %v563_v40 = vsub.f32 %v488_v24, %v2643_v15  ;;  %v527_v25 = vadd.f32 %v492_v50, %v2639_v14 }
  0xe3   :  { %450 = vst [vmem:[#allocation3] sm:$0x1] %v449_v52  ;;  %453 = vst [vmem:[#allocation4] sm:$0x1] %v452_v47  ;;  %v564_v55 = vsub.f32 %v492_v50, %v2639_v14  ;;  %v537_v49 = vmin.f32 %v521_v59, %v525_v23 }
  0xe4   :  { %v573_v46 = vmax.f32 %v557_v16, %v561_v34  ;;  %v538_v63 = vmin.f32 %v534_v30, %v526_v54  ;;  %v575_v31 = vmax.f32 %v571_v22, %v563_v40  ;;  %v539_v42 = vmin.f32 %v535_v20, %v527_v25 }
  0xe5   :  { %v496_v18 = vpop.permute.xlu1 %495  ;;  %v500_v4 = vpop.permute.xlu0 %499  ;;  %v576_v24 = vmax.f32 %v572_v19, %v564_v55 }
  0xe6   :  { %943 = vperm.xlu1 %2136, %v2414_v36   ;;  %v528_v58 = vadd.f32 %v496_v18, %v2693_v27  ;;  %v565_v28 = vsub.f32 %v496_v18, %v2693_v27  ;;  %v529_v37 = vadd.f32 %v500_v4, %v2668_v26  ;;  %v566_v0 = vsub.f32 %v500_v4, %v2668_v26 }
  0xe8   :  { %v540_v50 = vmin.f32 %v536_v32, %v528_v58  ;;  %v577_v52 = vmax.f32 %v573_v46, %v565_v28  ;;  %v541_v47 = vmin.f32 %v537_v49, %v529_v37  ;;  %v578_v39 = vmax.f32 %v574_v61, %v566_v0 }
  0xe9   :  { %v504_v41 = vpop.permute.xlu1 %503  ;;  %v508_v38 = vpop.permute.xlu0 %507 }
  0xea   :  { %v530_v48 = vadd.f32 %v504_v41, %v2728_v53  ;;  %v567_v56 = vsub.f32 %v504_v41, %v2728_v53  ;;  %v531_v36 = vadd.f32 %v508_v38, %v2710_v29  ;;  %v568_v62 = vsub.f32 %v508_v38, %v2710_v29  ;;  %947 = vperm.xlu1 %2136, %v2409_v35  }
  0xec   :  { %v542_v2 = vmin.f32 %v538_v63, %v530_v48  ;;  %v579_v51 = vmax.f32 %v575_v31, %v567_v56  ;;  %v543_v3 = vmin.f32 %v539_v42, %v531_v36  ;;  %v580_v43 = vmax.f32 %v576_v24, %v568_v62  ;;  %v592_v36 = vld [vmem:[#allocation3 + $0x1] sm:$0x1]  ;;  %v595_v62 = vld [vmem:[#allocation4 + $0x1] sm:$0x1] }
  0xed   :  { %v512_v33 = vpop.permute.xlu1 %511  ;;  %v516_v1 = vpop.permute.xlu0 %515 }
  0xee   :  { %v532_v57 = vadd.f32 %v512_v33, %v2759_v60  ;;  %v569_v5 = vsub.f32 %v512_v33, %v2759_v60  ;;  %v533_v16 = vadd.f32 %v516_v1, %v2738_v45  ;;  %v570_v59 = vsub.f32 %v516_v1, %v2738_v45 }
  0xef   :  { %v546_v44 = vmin.f32 %v542_v2, %v543_v3  ;;  %v583_v34 = vmax.f32 %v579_v51, %v580_v43 }
  0xf0   :  { %v544_v17 = vmin.f32 %v540_v50, %v532_v57  ;;  %v581_v35 = vmax.f32 %v577_v52, %v569_v5  ;;  %v545_v18 = vmin.f32 %v541_v47, %v533_v16  ;;  %v582_v4 = vmax.f32 %v578_v39, %v570_v59 }
  0xf2   :  { %v600_v30 = vpop.permute.xlu1 %599  ;;  %v604_v22 = vpop.permute.xlu0 %603  ;;  %v547_v20 = vmin.f32 %v544_v17, %v545_v18  ;;  %v584_v19 = vmax.f32 %v581_v35, %v582_v4 }
  0xf3   :  { %v662_v1 = vadd.f32 %v600_v30, %v2595_v7  ;;  %v699_v2 = vsub.f32 %v600_v30, %v2595_v7  ;;  %v663_v3 = vadd.f32 %v604_v22, %v2607_v9  ;;  %v700_v43 = vsub.f32 %v604_v22, %v2607_v9 }
  0xf4   :  { %v548_v23 = vmin.f32 %v546_v44, %v547_v20  ;;  %v585_v21 = vmax.f32 %v583_v34, %v584_v19 }
  0xf6   :  { %v608_v54 = vpop.permute.xlu1 %607  ;;  %v616_v40 = vpop.permute.xlu0 %615  ;;  %v549_v25 = vrot.slane %v548_v23, 4  ;;  %v586_v55 = vrot.slane %v585_v21, 4 }
  0xf7   :  { %v666_v47 = vadd.f32 %v616_v40, %v2621_v11  ;;  %v703_v39 = vsub.f32 %v616_v40, %v2621_v11  ;;  %v664_v17 = vadd.f32 %v608_v54, %v2583_v6  ;;  %v701_v35 = vsub.f32 %v608_v54, %v2583_v6 }
  0xf8   :  { %v550_v58 = vmin.f32 %v548_v23, %v549_v25  ;;  %v587_v28 = vmax.f32 %v585_v21, %v586_v55 }
  0xf9   :  { %v678_v18 = vmin.f32 %v662_v1, %v666_v47  ;;  %v715_v4 = vmax.f32 %v699_v2, %v703_v39 }
  0xfa   :  { %v612_v37 = vpop.permute.xlu1 %611  ;;  %v624_v0 = vpop.permute.xlu0 %623  ;;  %v551_v41 = vrot.slane %v550_v58, 2  ;;  %v588_v38 = vrot.slane %v587_v28, 2 }
  0xfb   :  { %v668_v51 = vadd.f32 %v624_v0, %v2633_v13  ;;  %v705_v57 = vsub.f32 %v624_v0, %v2633_v13  ;;  %v665_v44 = vadd.f32 %v612_v37, %v2601_v8  ;;  %v702_v34 = vsub.f32 %v612_v37, %v2601_v8 }
  0xfc   :  { %v552_v32 = vmin.f32 %v550_v58, %v551_v41  ;;  %v589_v46 = vmax.f32 %v587_v28, %v588_v38 }
  0xfd   :  { %v680_v22 = vmin.f32 %v664_v17, %v668_v51  ;;  %v717_v23 = vmax.f32 %v701_v35, %v705_v57 }
  0xfe   :  { %v620_v48 = vpop.permute.xlu1 %619  ;;  %v632_v56 = vpop.permute.xlu0 %631  ;;  %v553_v49 = vrot.slane %v552_v32, 1  ;;  %v590_v61 = vrot.slane %v589_v46, 1 }
  0xff   :  { %v667_v16 = vadd.f32 %v620_v48, %v2613_v10  ;;  %v704_v59 = vsub.f32 %v620_v48, %v2613_v10  ;;  %v670_v20 = vadd.f32 %v632_v56, %v2643_v15  ;;  %v707_v19 = vsub.f32 %v632_v56, %v2643_v15 }
 0x100   :  { %v554_v63 = vmin.f32 %v552_v32, %v553_v49  ;;  %v591_v31 = vmax.f32 %v589_v46, %v590_v61 }
 0x101   :  { %v679_v25 = vmin.f32 %v663_v3, %v667_v16  ;;  %v716_v55 = vmax.f32 %v700_v43, %v704_v59  ;;  %v682_v46 = vmin.f32 %v678_v18, %v670_v20  ;;  %v719_v48 = vmax.f32 %v715_v4, %v707_v19 }
 0x102   :  { %v628_v42 = vpop.permute.xlu1 %627  ;;  %v640_v24 = vpop.permute.xlu0 %639  ;;  %v593_v50 = vmin.f32 %v592_v36, %v554_v63  ;;  %v596_v52 = vmax.f32 %v595_v62, %v591_v31 }
 0x103   :  { %v669_v21 = vadd.f32 %v628_v42, %v2627_v12  ;;  %v706_v40 = vsub.f32 %v628_v42, %v2627_v12  ;;  %v672_v28 = vadd.f32 %v640_v24, %v2693_v27  ;;  %v709_v37 = vsub.f32 %v640_v24, %v2693_v27 }
 0x104   :  { %594 = vst [vmem:[#allocation3 + $0x1] sm:$0x1] %v593_v50  ;;  %597 = vst [vmem:[#allocation4 + $0x1] sm:$0x1] %v596_v52 }
 0x105   :  { %v681_v61 = vmin.f32 %v665_v44, %v669_v21  ;;  %v718_v36 = vmax.f32 %v702_v34, %v706_v40  ;;  %v684_v52 = vmin.f32 %v680_v22, %v672_v28  ;;  %v721_v47 = vmax.f32 %v717_v23, %v709_v37 }
 0x106   :  { %v636_v33 = vpop.permute.xlu1 %635  ;;  %v648_v5 = vpop.permute.xlu0 %647 }
 0x107   :  { %v671_v54 = vadd.f32 %v636_v33, %v2639_v14  ;;  %v708_v58 = vsub.f32 %v636_v33, %v2639_v14  ;;  %v674_v62 = vadd.f32 %v648_v5, %v2728_v53  ;;  %v711_v63 = vsub.f32 %v648_v5, %v2728_v53 }
 0x109   :  { %v683_v31 = vmin.f32 %v679_v25, %v671_v54  ;;  %v720_v42 = vmax.f32 %v716_v55, %v708_v58  ;;  %v686_v43 = vmin.f32 %v682_v46, %v674_v62  ;;  %v723_v16 = vmax.f32 %v719_v48, %v711_v63  ;;  %v736_v48 = vld [vmem:[#allocation3 + $0x2] sm:$0x1] }
 0x10a   :  { %v644_v30 = vpop.permute.xlu1 %643  ;;  %v656_v38 = vpop.permute.xlu0 %655 }
 0x10b   :  { %v673_v0 = vadd.f32 %v644_v30, %v2668_v26  ;;  %v710_v41 = vsub.f32 %v644_v30, %v2668_v26  ;;  %v676_v24 = vadd.f32 %v656_v38, %v2759_v60  ;;  %v713_v50 = vsub.f32 %v656_v38, %v2759_v60 }
 0x10d   :  { %v685_v39 = vmin.f32 %v681_v61, %v673_v0  ;;  %v722_v33 = vmax.f32 %v718_v36, %v710_v41  ;;  %v688_v5 = vmin.f32 %v684_v52, %v676_v24  ;;  %v725_v59 = vmax.f32 %v721_v47, %v713_v50 }
 0x10e   :  { %v652_v32 = vpop.permute.xlu1 %651 }
 0x10f   :  { %v675_v56 = vadd.f32 %v652_v32, %v2710_v29  ;;  %v712_v49 = vsub.f32 %v652_v32, %v2710_v29  ;;  %v744_v20 = vpop.permute.xlu0 %743 }
 0x111   :  { %v687_v2 = vmin.f32 %v683_v31, %v675_v56  ;;  %v724_v51 = vmax.f32 %v720_v42, %v712_v49  ;;  %v739_v56 = vld [vmem:[#allocation4 + $0x2] sm:$0x1] }
 0x112   :  { %v660_v1 = vpop.permute.xlu1 %659 }
 0x113   :  { %v677_v57 = vadd.f32 %v660_v1, %v2738_v45  ;;  %v714_v3 = vsub.f32 %v660_v1, %v2738_v45  ;;  %v690_v18 = vmin.f32 %v686_v43, %v687_v2  ;;  %v727_v4 = vmax.f32 %v723_v16, %v724_v51  ;;  %v2862_v28 = vpop.permute.xlu0 %755 }
 0x115   :  { %v689_v17 = vmin.f32 %v685_v39, %v677_v57  ;;  %v726_v35 = vmax.f32 %v722_v33, %v714_v3 }
 0x117   :  { %v691_v30 = vmin.f32 %v688_v5, %v689_v17  ;;  %v728_v44 = vmax.f32 %v725_v59, %v726_v35  ;;  %v2860_v34 = vpop.permute.xlu1 %747  ;;  %v764_v36 = vpop.permute.xlu0 %763  ;;  %v806_v59 = vadd.f32 %v744_v20, %v2595_v7  ;;  %v843_v17 = vsub.f32 %v744_v20, %v2595_v7 }
 0x118   :  { %v848_v20 = vsub.f32 %v764_v36, %v2613_v10 }
 0x119   :  { %v692_v19 = vmin.f32 %v690_v18, %v691_v30  ;;  %v729_v22 = vmax.f32 %v727_v4, %v728_v44  ;;  %v807_v4 = vadd.f32 %v2860_v34, %v2607_v9  ;;  %v844_v30 = vsub.f32 %v2860_v34, %v2607_v9 }
 0x11b   :  { %v693_v23 = vrot.slane %v692_v19, 4  ;;  %v730_v21 = vrot.slane %v729_v22, 4  ;;  %v752_v40 = vpop.permute.xlu1 %751  ;;  %v772_v42 = vpop.permute.xlu0 %771 }
 0x11d   :  { %v694_v25 = vmin.f32 %v692_v19, %v693_v23  ;;  %v731_v55 = vmax.f32 %v729_v22, %v730_v21  ;;  %v811_v23 = vadd.f32 %v764_v36, %v2613_v10  ;;  %v808_v21 = vadd.f32 %v752_v40, %v2583_v6 }
 0x11e   :  { %v860_v36 = vmax.f32 %v844_v30, %v848_v20 }
 0x11f   :  { %v695_v54 = vrot.slane %v694_v25, 2  ;;  %v732_v58 = vrot.slane %v731_v55, 2  ;;  %v760_v37 = vpop.permute.xlu1 %759  ;;  %v780_v50 = vpop.permute.xlu0 %779 }
 0x120   :  { %v810_v16 = vadd.f32 %v760_v37, %v2621_v11  ;;  %v847_v5 = vsub.f32 %v760_v37, %v2621_v11 }
 0x121   :  { %v696_v0 = vmin.f32 %v694_v25, %v695_v54  ;;  %v733_v41 = vmax.f32 %v731_v55, %v732_v58  ;;  %v845_v25 = vsub.f32 %v752_v40, %v2583_v6  ;;  %v813_v55 = vadd.f32 %v772_v42, %v2627_v12 }
 0x122   :  { %v850_v54 = vsub.f32 %v772_v42, %v2627_v12  ;;  %v822_v58 = vmin.f32 %v806_v59, %v810_v16  ;;  %v859_v34 = vmax.f32 %v843_v17, %v847_v5 }
 0x123   :  { %v697_v38 = vrot.slane %v696_v0, 1  ;;  %v734_v32 = vrot.slane %v733_v41, 1  ;;  %v768_v46 = vpop.permute.xlu1 %767  ;;  %v784_v39 = vpop.permute.xlu0 %783 }
 0x124   :  { %v812_v35 = vadd.f32 %v768_v46, %v2633_v13  ;;  %v849_v18 = vsub.f32 %v768_v46, %v2633_v13  ;;  %v809_v46 = vadd.f32 %v2862_v28, %v2601_v8 }
 0x125   :  { %v698_v49 = vmin.f32 %v696_v0, %v697_v38  ;;  %v735_v61 = vmax.f32 %v733_v41, %v734_v32  ;;  %v815_v0 = vadd.f32 %v780_v50, %v2639_v14  ;;  %v852_v41 = vsub.f32 %v780_v50, %v2639_v14 }
 0x126   :  { %v824_v38 = vmin.f32 %v808_v21, %v812_v35  ;;  %v861_v32 = vmax.f32 %v845_v25, %v849_v18 }
 0x127   :  { %v737_v62 = vmin.f32 %v736_v48, %v698_v49  ;;  %v740_v63 = vmax.f32 %v739_v56, %v735_v61  ;;  %v776_v31 = vpop.permute.xlu1 %775  ;;  %v792_v1 = vpop.permute.xlu0 %791  ;;  %v846_v48 = vsub.f32 %v2862_v28, %v2601_v8  ;;  %v823_v61 = vmin.f32 %v807_v4, %v811_v23 }
 0x128   :  { %v814_v44 = vadd.f32 %v776_v31, %v2643_v15  ;;  %v851_v19 = vsub.f32 %v776_v31, %v2643_v15  ;;  %v825_v31 = vmin.f32 %v809_v46, %v813_v55  ;;  %v818_v50 = vadd.f32 %v792_v1, %v2728_v53 }
 0x129   :  { %738 = vst [vmem:[#allocation3 + $0x2] sm:$0x1] %v737_v62  ;;  %741 = vst [vmem:[#allocation4 + $0x2] sm:$0x1] %v740_v63  ;;  %v816_v62 = vadd.f32 %v784_v39, %v2693_v27  ;;  %v853_v63 = vsub.f32 %v784_v39, %v2693_v27  ;;  %v862_v42 = vmax.f32 %v846_v48, %v850_v54 }
 0x12a   :  { %v826_v40 = vmin.f32 %v822_v58, %v814_v44  ;;  %v863_v56 = vmax.f32 %v859_v34, %v851_v19  ;;  %v855_v16 = vsub.f32 %v792_v1, %v2728_v53  ;;  %v827_v5 = vmin.f32 %v823_v61, %v815_v0 }
 0x12b   :  { %v2874_v51 = vpop.permute.xlu0 %803  ;;  %v864_v59 = vmax.f32 %v860_v36, %v852_v41  ;;  %v828_v17 = vmin.f32 %v824_v38, %v816_v62  ;;  %v865_v28 = vmax.f32 %v861_v32, %v853_v63 }
 0x12c   :  { %v2864_v24 = vpop.permute.xlu1 %887  ;;  %v830_v35 = vmin.f32 %v826_v40, %v818_v50  ;;  %v867_v18 = vmax.f32 %v863_v56, %v855_v16  ;;  %v821_v39 = vadd.f32 %v2874_v51, %v2738_v45  ;;  %v858_v19 = vsub.f32 %v2874_v51, %v2738_v45 }
 0x12d   :  { %v950_v21 = vadd.f32 %v2864_v24, %v2595_v7  ;;  %v987_v25 = vsub.f32 %v2864_v24, %v2595_v7 }
 0x130   :  { %v2866_v52 = vpop.permute.xlu1 %895 }
 0x131   :  { %v2878_v3 = vpop.permute.xlu0 %891  ;;  %v952_v54 = vadd.f32 %v2866_v52, %v2583_v6  ;;  %v989_v51 = vsub.f32 %v2866_v52, %v2583_v6 }
 0x132   :  { %v988_v58 = vsub.f32 %v2878_v3, %v2607_v9 }
 0x134   :  { %v2868_v47 = vpop.permute.xlu1 %899 }
 0x135   :  { %v904_v37 = vpop.permute.xlu0 %903  ;;  %v953_v34 = vadd.f32 %v2868_v47, %v2601_v8  ;;  %v990_v7 = vsub.f32 %v2868_v47, %v2601_v8 }
 0x136   :  { %v2923_v1 = vadd.f32 %v904_v37, %v2621_v11  ;;  %v991_v23 = vsub.f32 %v904_v37, %v2621_v11  ;;  %v951_v11 = vadd.f32 %v2878_v3, %v2607_v9 }
 0x138   :  { %v2870_v33 = vpop.permute.xlu1 %907  ;;  %v966_v0 = vmin.f32 %v950_v21, %v2923_v1  ;;  %v1003_v41 = vmax.f32 %v987_v25, %v991_v23 }
 0x139   :  { %v912_v44 = vpop.permute.xlu0 %911  ;;  %v955_v6 = vadd.f32 %v2870_v33, %v2613_v10  ;;  %v992_v52 = vsub.f32 %v2870_v33, %v2613_v10 }
 0x13a   :  { %v956_v8 = vadd.f32 %v912_v44, %v2633_v13  ;;  %v993_v47 = vsub.f32 %v912_v44, %v2633_v13 }
 0x13b   :  { %v967_v62 = vmin.f32 %v951_v11, %v955_v6  ;;  %v1004_v63 = vmax.f32 %v988_v58, %v992_v52 }
 0x13c   :  { %v2872_v2 = vpop.permute.xlu1 %915  ;;  %v968_v44 = vmin.f32 %v952_v54, %v956_v8 }
 0x13d   :  { %v924_v32 = vpop.permute.xlu0 %923  ;;  %v957_v40 = vadd.f32 %v2872_v2, %v2627_v12  ;;  %v994_v56 = vsub.f32 %v2872_v2, %v2627_v12 }
 0x13f   :  { %v1006_v1 = vmax.f32 %v990_v7, %v994_v56  ;;  %v880_v56 = vld [vmem:[#allocation3 + $0x3] sm:$0x1] }
 0x141   :  { %v940_v12 = vpop.permute.xlu0 %939 }
 0x142   :  { %v2876_v57 = vpop.permute.xlu1 %787 }
 0x143   :  { %v817_v4 = vadd.f32 %v2876_v57, %v2668_v26  ;;  %v854_v30 = vsub.f32 %v2876_v57, %v2668_v26 }
 0x145   :  { %v829_v24 = vmin.f32 %v825_v31, %v817_v4  ;;  %v866_v37 = vmax.f32 %v862_v42, %v854_v30  ;;  %v959_v31 = vadd.f32 %v924_v32, %v2639_v14  ;;  %v996_v42 = vsub.f32 %v924_v32, %v2639_v14 }
 0x146   :  { %v1005_v4 = vmax.f32 %v989_v51, %v993_v47  ;;  %v969_v30 = vmin.f32 %v953_v34, %v957_v40 }
 0x147   :  { %v2880_v43 = vpop.permute.xlu1 %919  ;;  %v833_v61 = vmin.f32 %v829_v24, %v821_v39  ;;  %v870_v10 = vmax.f32 %v866_v37, %v858_v19  ;;  %v971_v19 = vmin.f32 %v967_v62, %v959_v31  ;;  %v1008_v14 = vmax.f32 %v1004_v63, %v996_v42 }
 0x148   :  { %v958_v2 = vadd.f32 %v2880_v43, %v2643_v15 }
 0x14a   :  { %v970_v51 = vmin.f32 %v966_v0, %v958_v2 }
 0x14b   :  { %v2894_v22 = vpop.permute.xlu1 %927 }
 0x14f   :  { %v2908_v49 = vpop.permute.xlu1 %931 }
 0x150   :  { %v961_v23 = vadd.f32 %v2908_v49, %v2668_v26 }
 0x154   :  { %v796_v20 = vpop.permute.xlu1 %795 }
 0x155   :  { %v819_v57 = vadd.f32 %v796_v20, %v2710_v29  ;;  %v856_v55 = vsub.f32 %v796_v20, %v2710_v29  ;;  %v998_v20 = vsub.f32 %v2908_v49, %v2668_v26  ;;  %v973_v49 = vmin.f32 %v969_v30, %v961_v23  ;;  %v188_v23 = vld [vmem:[#allocation2] sm:$0xff] }
 0x157   :  { %v831_v9 = vmin.f32 %v827_v5, %v819_v57  ;;  %v868_v3 = vmax.f32 %v864_v59, %v856_v55  ;;  %v1010_v24 = vmax.f32 %v1006_v1, %v998_v20 }
 0x158   :  { %v800_v38 = vpop.permute.xlu1 %799 }
 0x159   :  { %v820_v46 = vadd.f32 %v800_v38, %v2759_v60  ;;  %v857_v48 = vsub.f32 %v800_v38, %v2759_v60  ;;  %v834_v50 = vmin.f32 %v830_v35, %v831_v9  ;;  %v871_v16 = vmax.f32 %v867_v18, %v868_v3 }
 0x15a   :  { %v960_v35 = vadd.f32 %v2894_v22, %v2693_v27  ;;  %v997_v18 = vsub.f32 %v2894_v22, %v2693_v27 }
 0x15b   :  { %v832_v33 = vmin.f32 %v828_v17, %v820_v46  ;;  %v869_v36 = vmax.f32 %v865_v28, %v857_v48  ;;  %v995_v17 = vsub.f32 %v2880_v43, %v2643_v15  ;;  %v963_v15 = vadd.f32 %v940_v12, %v2710_v29 }
 0x15c   :  { %v1000_v43 = vsub.f32 %v940_v12, %v2710_v29  ;;  %v972_v58 = vmin.f32 %v968_v44, %v960_v35  ;;  %v1009_v34 = vmax.f32 %v1005_v4, %v997_v18 }
 0x15d   :  { %v835_v5 = vmin.f32 %v832_v33, %v833_v61  ;;  %v872_v13 = vmax.f32 %v869_v36, %v870_v10  ;;  %v936_v59 = vpop.permute.xlu1 %935  ;;  %v1007_v11 = vmax.f32 %v1003_v41, %v995_v17  ;;  %v975_v0 = vmin.f32 %v971_v19, %v963_v15  ;;  %v883_v61 = vld [vmem:[#allocation4 + $0x3] sm:$0x1] }
 0x15e   :  { %v962_v55 = vadd.f32 %v936_v59, %v2728_v53  ;;  %v999_v54 = vsub.f32 %v936_v59, %v2728_v53  ;;  %v1012_v41 = vmax.f32 %v1008_v14, %v1000_v43 }
 0x15f   :  { %v836_v28 = vmin.f32 %v834_v50, %v835_v5  ;;  %v873_v39 = vmax.f32 %v871_v16, %v872_v13 }
 0x160   :  { %v974_v29 = vmin.f32 %v970_v51, %v962_v55  ;;  %v1011_v38 = vmax.f32 %v1007_v11, %v999_v54 }
 0x161   :  { %v837_v21 = vrot.slane %v836_v28, 4  ;;  %v874_v25 = vrot.slane %v873_v39, 4  ;;  %v944_v57 = vpop.permute.xlu1 %943 }
 0x162   :  { %v964_v7 = vadd.f32 %v944_v57, %v2759_v60  ;;  %v1001_v26 = vsub.f32 %v944_v57, %v2759_v60  ;;  %v978_v10 = vmin.f32 %v974_v29, %v975_v0  ;;  %v1015_v33 = vmax.f32 %v1011_v38, %v1012_v41 }
 0x163   :  { %v838_v27 = vmin.f32 %v836_v28, %v837_v21  ;;  %v875_v22 = vmax.f32 %v873_v39, %v874_v25  ;;  %v1024_v28 = vld [vmem:[#allocation3 + $0x4] sm:$0x1]  ;;  %v1027_v39 = vld [vmem:[#allocation4 + $0x4] sm:$0x1] }
 0x164   :  { %v976_v46 = vmin.f32 %v972_v58, %v964_v7  ;;  %v1013_v48 = vmax.f32 %v1009_v34, %v1001_v26 }
 0x165   :  { %v839_v37 = vrot.slane %v838_v27, 2  ;;  %v876_v6 = vrot.slane %v875_v22, 2  ;;  %v948_v52 = vpop.permute.xlu1 %947 }
 0x166   :  { %v965_v32 = vadd.f32 %v948_v52, %v2738_v45  ;;  %v1002_v53 = vsub.f32 %v948_v52, %v2738_v45 }
 0x167   :  { %v840_v9 = vmin.f32 %v838_v27, %v839_v37  ;;  %v877_v3 = vmax.f32 %v875_v22, %v876_v6 }
 0x168   :  { %v977_v8 = vmin.f32 %v973_v49, %v965_v32  ;;  %v1014_v47 = vmax.f32 %v1010_v24, %v1002_v53 }
 0x169   :  { %v841_v60 = vrot.slane %v840_v9, 1  ;;  %v878_v40 = vrot.slane %v877_v3, 1 }
 0x16a   :  { %v979_v36 = vmin.f32 %v976_v46, %v977_v8  ;;  %v1016_v62 = vmax.f32 %v1013_v48, %v1014_v47 }
 0x16b   :  { %v842_v63 = vmin.f32 %v840_v9, %v841_v60  ;;  %v879_v31 = vmax.f32 %v877_v3, %v878_v40 }
 0x16c   :  { %v980_v42 = vmin.f32 %v978_v10, %v979_v36  ;;  %v1017_v45 = vmax.f32 %v1015_v33, %v1016_v62 }
 0x16d   :  { %v881_v50 = vmin.f32 %v880_v56, %v842_v63  ;;  %v884_v16 = vmax.f32 %v883_v61, %v879_v31 }
 0x16e   :  { %v981_v5 = vrot.slane %v980_v42, 4  ;;  %v1018_v13 = vrot.slane %v1017_v45, 4 }
 0x16f   :  { %882 = vst [vmem:[#allocation3 + $0x3] sm:$0x1] %v881_v50  ;;  %885 = vst [vmem:[#allocation4 + $0x3] sm:$0x1] %v884_v16 }
 0x170   :  { %v982_v59 = vmin.f32 %v980_v42, %v981_v5  ;;  %v1019_v44 = vmax.f32 %v1017_v45, %v1018_v13 }
 0x172   :  { %v983_v4 = vrot.slane %v982_v59, 2  ;;  %v1020_v30 = vrot.slane %v1019_v44, 2 }
 0x174   :  { %v984_v1 = vmin.f32 %v982_v59, %v983_v4  ;;  %v1021_v12 = vmax.f32 %v1019_v44, %v1020_v30 }
 0x176   :  { %v985_v2 = vrot.slane %v984_v1, 1  ;;  %v1022_v17 = vrot.slane %v1021_v12, 1 }
 0x178   :  { %v986_v19 = vmin.f32 %v984_v1, %v985_v2  ;;  %v1023_v14 = vmax.f32 %v1021_v12, %v1022_v17 }
 0x17a   :  { %v1025_v35 = vmin.f32 %v1024_v28, %v986_v19  ;;  %v1028_v18 = vmax.f32 %v1027_v39, %v1023_v14 }
 0x17c   :  { %1026 = vst [vmem:[#allocation3 + $0x4] sm:$0x1] %v1025_v35  ;;  %1029 = vst [vmem:[#allocation4 + $0x4] sm:$0x1] %v1028_v18 }
 0x18e   :  { %v256_v20 = vpop.f32.mrf.mxu0 }
 0x18f   :  { %v260_v21 = vadd.f32 %v256_v20, %v188_v23 }
 0x190   :  { %v2030_v25 = vpop.f32.mrf.mxu0 }
 0x191   :  { %261 = vst [vmem:[#allocation2] sm:$0xff] %v260_v21 }
 0x192 PF:  { %v1037_v15 = vlaneseq  ;;  %v1049_v43 = vld [vmem:[%s3148_s6] sm:$0xff]  ;;  %vm1053_vm2 = vcmask 39936   ;;  %vm1155_vm3 = vcmask 64512   ;;  %v2173_v54 = vmov 0   ;;  %v1046_v11 = vld [vmem:[%s3147_s5 + $0x8] sm:$0xff]  ;;  %v1047_v22 = vld [vmem:[%s3147_s5 + $0x10] sm:$0xff] }
 0x193   :  { %v1045_v55 = vld [vmem:[%s3147_s5] sm:$0xff]  ;;  %2137 = vset.pattern.permute.xlu0 %v2173_v54  ;;  %2033 = vmatprep.mubr.msk.f32.mxu0 %vm1053_vm2, %v1049_v43  ;;  %v1048_v34 = vld [vmem:[%s3147_s5 + $0x18] sm:$0xff]  ;;  %v1035_v26 = vld [vmem:[#allocation3] sm:$0x1f]  ;;  %vm1066_vm4 = vcmask 1044480   ;;  %vm1421_vm6 = vcmask 261120  }
 0x194   :  { %v1038_v51 = vshrl.u32 %v1037_v15, 7  ;;  %2041 = vmatprep.mubr.msk.f32.mxu1 %vm1155_vm3, %v1045_v55  ;;  %2138 = vset.pattern.permute.xlu1 %v2173_v54  ;;  %v1364_v7 = vld [vmem:[%s3150_s8 + $0x18] sm:$0xff]  ;;  %v1043_v24 = vld [vmem:[#allocation4] sm:$0x1f]  ;;  %v1362_v37 = vld [vmem:[%s3150_s8 + $0x8] sm:$0xff]  ;;  %vm2174_vm7 = vmmov 0  }
 0x195   :  { %1382 = vperm.xlu0 %2137, %v1364_v7   ;;  %v1363_v6 = vld [vmem:[%s3150_s8 + $0x10] sm:$0xff]  ;;  %1372 = vperm.xlu1 %2138, %v1362_v37   ;;  %v1361_v52 = vld [vmem:[%s3150_s8] sm:$0xff]  ;;  %v1050_v32 = vld [vmem:[%s3148_s6 + $0x8] sm:$0xff]  ;;  %s2175_s28 = smov [#allocation8]  }
 0x196   :  { %v1039_v58 = vsub.s32 7, %v1038_v51  ;;  %v1051_v53 = vld [vmem:[%s3148_s6 + $0x10] sm:$0xff]  ;;  %v1400_v0 = vld [vmem:[%s3152_s10 + $0x18] sm:$0xff]  ;;  %v1253_v3 = vld [vmem:[%s3149_s7] sm:$0xff] }
 0x197   :  { %v1399_v41 = vld [vmem:[%s3152_s10 + $0x10] sm:$0xff]  ;;  %v1052_v9 = vld [vmem:[%s3148_s6 + $0x18] sm:$0xff]  ;;  %v1398_v46 = vld [vmem:[%s3152_s10 + $0x8] sm:$0xff] }
 0x198   :  { %v1033_v57 = vld [vmem:[#allocation2] sm:$0xff]  ;;  %v1254_v8 = vld [vmem:[%s3149_s7 + $0x8] sm:$0xff]  ;;  %v1255_v47 = vld [vmem:[%s3149_s7 + $0x10] sm:$0xff] }
 0x199   :  { %vm1034_vm1 = vcmp.gt.f32.partialorder %v1033_v57, 0.0  ;;  %2039 = vmatprep.subr.mxu1 %v1033_v57  ;;  %1377 = vperm.xlu0 %2137, %v1363_v6   ;;  %v1397_v48 = vld [vmem:[%s3152_s10] sm:$0xff]  ;;  %v1530_v60 = vld [vmem:[%s3154_s12 + $0x18] sm:$0xff]  ;;  %v1529_v40 = vld [vmem:[%s3154_s12 + $0x10] sm:$0xff] }
 0x19a   :  { %2040 = vmatpush3.msra.mxu1 %v1033_v57  ;;  %v1036_v27 = vsel %vm1034_vm1, 1, %v2173_v54  ;;  %1367 = vperm.xlu1 %2138, %v1361_v52   ;;  %v1256_v56 = vld [vmem:[%s3149_s7 + $0x18] sm:$0xff]  ;;  %v1528_v61 = vld [vmem:[%s3154_s12 + $0x8] sm:$0xff]  ;;  %v1527_v10 = vld [vmem:[%s3154_s12] sm:$0xff]  ;;  %s1868_s12 = sshll.u32 %s2175_s28, 4  ;;  %s1869_s12 = int_to_ptr.vmem [resolvable:$true] %s1868_s12 }
 0x19b   :  { %2042 = vmatmul.mubr.msk.f32.vlgmr.msra.gmra.mxu1 %vm1155_vm3, %v1046_v11  ;;  %v1040_v49 = vrot.slane %v1036_v27, %v1039_v58  ;;  %v1659_v33 = vld [vmem:[%s3156_s14 + $0x18] sm:$0xff]  ;;  %v1658_v36 = vld [vmem:[%s3156_s14 + $0x10] sm:$0xff]  ;;  %v1657_v62 = vld [vmem:[%s3156_s14 + $0x8] sm:$0xff]  ;;  %s2139_s29 = scalar_lea.vmem %s1869_s12, 32  ;;  %p2144_p4 = scmp.lt.s32.totalorder %s1869_s12, %s1869_s12 }
 0x19c   :  { %2044 = vmatprep.mubr.msk.f32.mxu1 %vm1155_vm3, %v1047_v22  ;;  %v1656_v63 = vld [vmem:[%s3156_s14] sm:$0xff]  ;;  %v1394_v58 = vld [vmem:[%s3151_s9 + $0x8] sm:$0xff]  ;;  %v1396_v7 = vld [vmem:[%s3151_s9 + $0x18] sm:$0xff]  ;;  %p2140_p3 = scmp.ne.s32.totalorder %s1869_s12, %s2139_s29  ;;  %p2145_p5 = scmp.lt.s32.totalorder %s2139_s29, %s2139_s29 }
 0x19d   :  { %vm1041_vm5 = vcmp.eq.s32.totalorder %v1040_v49, 1  ;;  %1418 = vperm.xlu0 %2137, %v1400_v0   ;;  %v1782_v31 = vld [vmem:[%s3158_s16] sm:$0x3] }
 0x19e   :  { %v1042_v29 = vsel %vm1041_vm5, %v1035_v26, 0.0  ;;  %v1044_v38 = vsel %vm1041_vm5, %v1043_v24, 0.0  ;;  %1413 = vperm.xlu1 %2138, %v1399_v41   ;;  %v1393_v42 = vld [vmem:[%s3151_s9] sm:$0xff]  ;;  %p2146_p6 = por %p2145_p5, %p2144_p4 }
 0x19f   :  { %2045 = vmatmul.mubr.msk.f32.gmra.mxu1 %vm1155_vm3, %v1048_v34  ;;  %2031 = vmatprep.subr.msk.mxu0 %vm1066_vm4, %v1042_v29  ;;  %v1395_v34 = vld [vmem:[%s3151_s9 + $0x10] sm:$0xff]  ;;  %v1523_v26 = vld [vmem:[%s3153_s11] sm:$0xff] }
 0x1a0   :  { %2032 = vmatpush3.msk.msra.mxu0 %vm1066_vm4, %v1042_v29  ;;  %2063 = vmatprep.mubr.msk.f32.mxu1 %vm1421_vm6, %v1393_v42  ;;  %p2147_p7 = pnand %p2146_p6, %p2140_p3 }
 0x1a1   :  { %2034 = vmatmul.mubr.msk.f32.vlgmr.msra.gmra.mxu0 %vm1053_vm2, %v1050_v32  ;;  %2047 = vmatprep.subr.msk.mxu0 %vm1066_vm4, %v1044_v38 }
 0x1a2   :  { %2048 = vmatpush3.msk.msra.mxu0 %vm1066_vm4, %v1044_v38  ;;  %2036 = vmatprep.mubr.msk.f32.mxu0 %vm1053_vm2, %v1051_v53 }
 0x1a3   :  { %1408 = vperm.xlu0 %2137, %v1398_v46   ;;  %1403 = vperm.xlu1 %2138, %v1397_v48  }
 0x1a5   :  { %2037 = vmatmul.mubr.msk.f32.gmra.mxu0 %vm1053_vm2, %v1052_v9 }
 0x1a6   :  { %2049 = vmatprep.mubr.msk.f32.mxu0 %vm1053_vm2, %v1253_v3 }
 0x1a7   :  { %1548 = vperm.xlu0 %2137, %v1530_v60   ;;  %1543 = vperm.xlu1 %2138, %v1529_v40   ;;  %v1525_v60 = vld [vmem:[%s3153_s11 + $0x10] sm:$0xff]  ;;  %v3168_v40 = vmov 0.0  }
 0x1a9   :  { %2050 = vmatmul.mubr.msk.f32.vlgmr.msra.gmra.mxu0 %vm1053_vm2, %v1254_v8 }
 0x1aa   :  { %2052 = vmatprep.mubr.msk.f32.mxu0 %vm1053_vm2, %v1255_v47  ;;  %v1524_v47 = vld [vmem:[%s3153_s11 + $0x8] sm:$0xff] }
 0x1ab   :  { %1538 = vperm.xlu0 %2137, %v1528_v61   ;;  %1533 = vperm.xlu1 %2138, %v1527_v10   ;;  %v1652_v61 = vld [vmem:[%s3155_s13] sm:$0xff] }
 0x1ad   :  { %2053 = vmatmul.mubr.msk.f32.gmra.mxu0 %vm1053_vm2, %v1256_v56  ;;  %v1526_v56 = vld [vmem:[%s3153_s11 + $0x18] sm:$0xff] }
 0x1ae   :  { %2077 = vmatprep.mubr.msk.f32.mxu0 %vm1421_vm6, %v1523_v26 }
 0x1af   :  { %1677 = vperm.xlu0 %2137, %v1659_v33   ;;  %1672 = vperm.xlu1 %2138, %v1658_v36  }
 0x1b3   :  { %1667 = vperm.xlu0 %2137, %v1657_v62   ;;  %1662 = vperm.xlu1 %2138, %v1656_v63  }
 0x1b7   :  { %1785 = vperm.xlu0 %2137, %v1782_v31  }
 0x210   :  { %v1383_v30 = vpop.permute.xlu0 %1382  ;;  %v1373_v28 = vpop.permute.xlu1 %1372 }
 0x214   :  { %v1378_v57 = vpop.permute.xlu0 %1377 }
 0x215   :  { %v1368_v54 = vpop.permute.xlu1 %1367 }
 0x218   :  { %v1419_v49 = vpop.permute.xlu0 %1418 }
 0x219   :  { %v1414_v37 = vpop.permute.xlu1 %1413 }
 0x21e   :  { %v1409_v38 = vpop.permute.xlu0 %1408  ;;  %v1404_v9 = vpop.permute.xlu1 %1403 }
 0x222   :  { %v1549_v10 = vpop.permute.xlu0 %1548  ;;  %v1544_v36 = vpop.permute.xlu1 %1543 }
 0x226   :  { %v1539_v42 = vpop.permute.xlu0 %1538 }
 0x25b   :  { %v2043_v45 = vpop.f32.mrf.mxu1 }
 0x25d   :  { %v1234_v5 = vpop.f32.mrf.mxu1 }
 0x25f   :  { %v2046_v59 = vpop.f32.mrf.mxu1 }
 0x261   :  { %v2035_v50 = vpop.f32.mrf.mxu0  ;;  %v1244_v1 = vpop.f32.mrf.mxu1 }
 0x262   :  { %v1240_v2 = vadd.f32 %v2043_v45, %v2035_v50 }
 0x263   :  { %v1136_v16 = vpop.f32.mrf.mxu0 }
 0x264   :  { %v1235_v19 = vadd.f32 %v1234_v5, %v1136_v16 }
 0x265   :  { %v2038_v13 = vpop.f32.mrf.mxu0 }
 0x266   :  { %v1250_v17 = vadd.f32 %v2046_v59, %v2038_v13  ;;  %v1534_v13 = vpop.permute.xlu1 %1533 }
 0x267   :  { %v1146_v44 = vpop.f32.mrf.mxu0 }
 0x268   :  { %v1245_v14 = vadd.f32 %v1244_v1, %v1146_v44  ;;  %v1653_v1 = vld [vmem:[%s3155_s13 + $0x8] sm:$0xff] }
 0x269   :  { %v2051_v4 = vpop.f32.mrf.mxu0 }
 0x26a   :  { %v1358_v35 = vadd.f32 %v2051_v4, %v1240_v2  ;;  %v1655_v2 = vld [vmem:[%s3155_s13 + $0x18] sm:$0xff] }
 0x26b   :  { %v1338_v12 = vpop.f32.mrf.mxu0 }
 0x26c   :  { %v1357_v20 = vadd.f32 %v1338_v12, %v1235_v19  ;;  %v1386_v15 = vadd.f32 %v1373_v28, %v1358_v35  ;;  %v1654_v12 = vld [vmem:[%s3155_s13 + $0x10] sm:$0xff] }
 0x26d   :  { %v2054_v39 = vpop.f32.mrf.mxu0 }
 0x26e   :  { %v1360_v18 = vadd.f32 %v2054_v39, %v1250_v17  ;;  %v1385_v51 = vadd.f32 %v1368_v54, %v1357_v20  ;;  %v1390_v27 = vmax.f32 %v1386_v15, 0.0  ;;  %v1678_v17 = vpop.permute.xlu0 %1677  ;;  %v1673_v39 = vpop.permute.xlu1 %1672 }
 0x26f   :  { %v1348_v23 = vpop.f32.mrf.mxu0 }
 0x270   :  { %v1388_v21 = vadd.f32 %v1383_v30, %v1360_v18  ;;  %v1359_v25 = vadd.f32 %v1348_v23, %v1245_v14  ;;  %v1389_v22 = vmax.f32 %v1385_v51, 0.0  ;;  %v1781_v51 = vld [vmem:[%s3157_s15] sm:$0x3] }
 0x272   :  { %v1392_v43 = vmax.f32 %v1388_v21, 0.0  ;;  %v1387_v55 = vadd.f32 %v1378_v57, %v1359_v25  ;;  %v1668_v18 = vpop.permute.xlu0 %1667  ;;  %v1663_v57 = vpop.permute.xlu1 %1662 }
 0x274   :  { %v1391_v11 = vmax.f32 %v1387_v55, 0.0  ;;  %2055 = vmatprep.subr.mxu1 %v1392_v43 }
 0x275   :  { %2056 = vmatpush3.msra.mxu1 %v1392_v43 }
 0x276   :  { %2057 = vmatprep.subr.mxu1 %v1391_v11 }
 0x277   :  { %2058 = vmatpush3.msra.mxu1 %v1391_v11  ;;  %v1786_v11 = vpop.permute.xlu0 %1785 }
 0x278   :  { %2059 = vmatprep.subr.mxu1 %v1390_v27 }
 0x279   :  { %2060 = vmatpush3.msra.mxu1 %v1390_v27 }
 0x27a   :  { %2061 = vmatprep.subr.mxu1 %v1389_v22 }
 0x27b   :  { %2062 = vmatpush3.msra.mxu1 %v1389_v22 }
 0x27c   :  { %2064 = vmatmul.mubr.msk.f32.vlgmr.msra.gmra.mxu1 %vm1421_vm6, %v1394_v58 }
 0x27d   :  { %2066 = vmatprep.mubr.msk.f32.mxu1 %vm1421_vm6, %v1395_v34 }
 0x280   :  { %2067 = vmatmul.mubr.msk.f32.gmra.mxu1 %vm1421_vm6, %v1396_v7 }
 0x281   :  { %2091 = vmatprep.mubr.msk.f32.mxu1 %vm1421_vm6, %v1652_v61 }
 0x33c   :  { %v2065_v24 = vpop.f32.mrf.mxu1 }
 0x33d   :  { %v1506_v53 = vadd.f32 %v2065_v24, %v1409_v38 }
 0x33e   :  { %v1500_v6 = vpop.f32.mrf.mxu1 }
 0x33f   :  { %v1501_v3 = vadd.f32 %v1500_v6, %v1404_v9  ;;  %v1520_v48 = vmax.f32 %v1506_v53, 0.0 }
 0x340   :  { %v2068_v52 = vpop.f32.mrf.mxu1 }
 0x341   :  { %v1516_v29 = vadd.f32 %v2068_v52, %v1419_v49  ;;  %v1519_v8 = vmax.f32 %v1501_v3, 0.0 }
 0x342   :  { %v1510_v32 = vpop.f32.mrf.mxu1 }
 0x343   :  { %v1522_v0 = vmax.f32 %v1516_v29, 0.0  ;;  %v1511_v41 = vadd.f32 %v1510_v32, %v1414_v37 }
 0x345   :  { %v1521_v46 = vmax.f32 %v1511_v41, 0.0  ;;  %2069 = vmatprep.subr.mxu0 %v1522_v0 }
 0x346   :  { %2070 = vmatpush3.msra.mxu0 %v1522_v0 }
 0x347   :  { %2071 = vmatprep.subr.mxu0 %v1521_v46 }
 0x348   :  { %2072 = vmatpush3.msra.mxu0 %v1521_v46 }
 0x349   :  { %2073 = vmatprep.subr.mxu0 %v1520_v48 }
 0x34a   :  { %2074 = vmatpush3.msra.mxu0 %v1520_v48 }
 0x34b   :  { %2075 = vmatprep.subr.mxu0 %v1519_v8 }
 0x34c   :  { %2076 = vmatpush3.msra.mxu0 %v1519_v8 }
 0x34d   :  { %2078 = vmatmul.mubr.msk.f32.vlgmr.msra.gmra.mxu0 %vm1421_vm6, %v1524_v47  ;;  %2097 = vmatprep.subr.mxu0 %v3168_v40 }
 0x34e   :  { %2080 = vmatprep.mubr.msk.f32.mxu0 %vm1421_vm6, %v1525_v60 }
 0x351   :  { %2081 = vmatmul.mubr.msk.f32.gmra.mxu0 %vm1421_vm6, %v1526_v56 }
 0x352   :  { %2105 = vmatprep.mubr.msk.f32.mxu0 %vm2174_vm7, %v3168_v40 }
 0x40d   :  { %v2079_v33 = vpop.f32.mrf.mxu0 }
 0x40e   :  { %v1635_v50 = vadd.f32 %v2079_v33, %v1539_v42 }
 0x40f   :  { %v1629_v62 = vpop.f32.mrf.mxu0 }
 0x410   :  { %v1630_v59 = vadd.f32 %v1629_v62, %v1534_v13  ;;  %v1649_v4 = vmax.f32 %v1635_v50, 0.0 }
 0x411   :  { %v2082_v63 = vpop.f32.mrf.mxu0 }
 0x412   :  { %v1645_v31 = vadd.f32 %v2082_v63, %v1549_v10  ;;  %v1648_v30 = vmax.f32 %v1630_v59, 0.0 }
 0x413   :  { %v1639_v45 = vpop.f32.mrf.mxu0 }
 0x414   :  { %v1651_v16 = vmax.f32 %v1645_v31, 0.0  ;;  %v1640_v5 = vadd.f32 %v1639_v45, %v1544_v36 }
 0x416   :  { %v1650_v44 = vmax.f32 %v1640_v5, 0.0  ;;  %2083 = vmatprep.subr.mxu1 %v1651_v16 }
 0x417   :  { %2084 = vmatpush3.msra.mxu1 %v1651_v16 }
 0x418   :  { %2085 = vmatprep.subr.mxu1 %v1650_v44 }
 0x419   :  { %2086 = vmatpush3.msra.mxu1 %v1650_v44 }
 0x41a   :  { %2087 = vmatprep.subr.mxu1 %v1649_v4 }
 0x41b   :  { %2088 = vmatpush3.msra.mxu1 %v1649_v4 }
 0x41c   :  { %2089 = vmatprep.subr.mxu1 %v1648_v30 }
 0x41d   :  { %2090 = vmatpush3.msra.mxu1 %v1648_v30 }
 0x41e   :  { %2092 = vmatmul.mubr.msk.f32.vlgmr.msra.gmra.mxu1 %vm1421_vm6, %v1653_v1 }
 0x41f   :  { %2094 = vmatprep.mubr.msk.f32.mxu1 %vm1421_vm6, %v1654_v12 }
 0x422   :  { %2095 = vmatmul.mubr.msk.f32.gmra.mxu1 %vm1421_vm6, %v1655_v2 }
 0x4de   :  { %v2093_v28 = vpop.f32.mrf.mxu1 }
 0x4df   :  { %v1764_v20 = vadd.f32 %v2093_v28, %v1668_v18 }
 0x4e0   :  { %v1758_v19 = vpop.f32.mrf.mxu1 }
 0x4e1   :  { %v1759_v15 = vadd.f32 %v1758_v19, %v1663_v57  ;;  %v1778_v55 = vmax.f32 %v1764_v20, 0.0 }
 0x4e2   :  { %v2096_v14 = vpop.f32.mrf.mxu1 }
 0x4e3   :  { %v1774_v35 = vadd.f32 %v2096_v14, %v1678_v17  ;;  %v1777_v54 = vmax.f32 %v1759_v15, 0.0 }
 0x4e4   :  { %v1768_v23 = vpop.f32.mrf.mxu1 }
 0x4e5   :  { %v1780_v21 = vmax.f32 %v1774_v35, 0.0  ;;  %v1769_v25 = vadd.f32 %v1768_v23, %v1673_v39 }
 0x4e7   :  { %v1779_v43 = vmax.f32 %v1769_v25, 0.0  ;;  %2098 = vmatpush3.msra.mxu0 %v1780_v21 }
 0x4e8   :  { %2099 = vmatprep.subr.mxu0 %v3168_v40 }
 0x4e9   :  { %2100 = vmatpush3.msra.mxu0 %v1779_v43 }
 0x4ea   :  { %2101 = vmatprep.subr.mxu0 %v3168_v40 }
 0x4eb   :  { %2102 = vmatpush3.msra.mxu0 %v1778_v55 }
 0x4ec   :  { %2103 = vmatprep.subr.mxu0 %v3168_v40 }
 0x4ed   :  { %2104 = vmatpush3.msra.mxu0 %v1777_v54 }
 0x4ee   :  { %2106 = vmatmul.mubr.msk.f32.vlgmr.msra.gmra.mxu0 %vm1421_vm6, %v1781_v51 }
 0x5ae   :  { %v1857_v27 = vpop.f32.mrf.mxu0 }
 0x5af   :  { %v1858_v22 = vadd.f32 %v1857_v27, %v1786_v11 }
 0x5b0   :  { %v2107_v58 = vpop.f32.mrf.mxu0 }
 0x5b1   :  { %1861 = vst [vmem:[#allocation8] sm:$0x3] %v1858_v22 }
 0x5b2   :  { %2150 = shalt.err (!%p2147_p7)
}
 0x5b3   :  { %1871 = dma.vmem_to_hbm [thread:$0]  %s1869_s12, 32, %s3159_s17, [#allocation9]  }
 0x5b4   :  { %2159 = dma.done.wait [#allocation9], 32  }
 0x5b5   :  { %2160 = vsyncadd [#allocation9], 4294967264 }
 0x5b6   :  { %1875 = vsyncpa [#allocation9], 1 }

</bundles_post_ra>
